<compile_context>
chip_gen: v7x
topology: tpu7x:2x2x1
jax: 0.10.0
libtpu: 0.0.40
codegen_flags: <defaults>
</compile_context>

<pallas_src>
import math
import functools

import jax
import jax.numpy as jnp
from jax.experimental import pallas as pl
from jax.experimental.pallas import tpu as pltpu


def _round_up(x, m):
    return (x + m - 1) // m * m


def _pick_tr(Ho, Wo):
    """Row tile: smallest divisor of Ho giving M = tr*Wo >= 256, preferring >=2 row
    blocks (keeps v7x's second TensorCore busy at coarse pyramid levels)."""
    cands = [d for d in range(1, Ho + 1) if Ho % d == 0 and d * Wo <= 4096]
    if not cands:
        return 1
    two = [d for d in cands if Ho // d >= 2]
    pool = two if two else cands
    for d in pool:
        if d * Wo >= 256:
            return d
    return pool[-1]


# ----------------------------------------------------------------------------
# Pallas kernel 1: fused stride-1 KxK conv (+bias, +optional LeakyReLU) over a
# LIST of channel-blocked inputs.  Padded inputs + per-part weights stay resident
# in VMEM; one grid step produces a (tr, Wo, Cout) tile with M = tr*Wo matmuls.
# ----------------------------------------------------------------------------
def _conv_parts_kernel(*refs, cins, KH, KW, Wo, tr, dil, slope):
    k = len(cins)
    x_refs = refs[:k]
    w_refs = refs[k:2 * k]
    b_ref = refs[2 * k]
    o_ref = refs[2 * k + 1]
    acc_ref = refs[2 * k + 2]

    r0 = pl.program_id(1) * tr
    first = True
    for j in range(k):
        C = cins[j]
        for ky in range(KH):
            rows = x_refs[j][0, pl.ds(r0 + ky * dil, tr)]          # (tr, Wp, C) bf16
            for kx in range(KW):
                s = kx * dil
                xt = rows[:, s:s + Wo, :].reshape(tr * Wo, C)
                p = jnp.dot(xt, w_refs[j][ky * KW + kx],
                            preferred_element_type=jnp.float32)
                if first:
                    acc_ref[...] = p                               # no memset
                    first = False
                else:
                    acc_ref[...] += p
    y = acc_ref[...] + b_ref[...]
    if slope is not None:
        y = jnp.where(y >= 0.0, y, y * slope)
    o_ref[0] = y.reshape(tr, Wo, -1).astype(o_ref.dtype)


def conv2d_parts(parts, w, b, *, KH=3, KW=3, dil=1, slope=0.1, out_dtype=jnp.bfloat16):
    """Stride-1 conv over spatially pre-padded channel-blocked inputs.

    parts: list of (N, Hp, Wp, C_j) arrays (already padded spatially, any float dtype),
    w: (KH, KW, sum C_j, Cout), b: (Cout,).  Output: (N, Ho, Wo, Cout) in out_dtype.
    """
    parts = [p.astype(jnp.bfloat16) for p in parts]
    N, Hp, Wp, _ = parts[0].shape
    cins = [int(p.shape[-1]) for p in parts]
    Cout = int(w.shape[-1])
    Ho = Hp - dil * (KH - 1)
    Wo = Wp - dil * (KW - 1)
    tr = _pick_tr(Ho, Wo)

    offs = [0]
    for c in cins:
        offs.append(offs[-1] + c)
    w_parts = [w[:, :, offs[j]:offs[j + 1], :]
               .reshape(KH * KW, cins[j], Cout).astype(jnp.bfloat16)
               for j in range(len(cins))]
    b2 = b.reshape(1, Cout).astype(jnp.float32)

    in_specs = (
        [pl.BlockSpec((1, Hp, Wp, c), lambda n, r: (n, 0, 0, 0)) for c in cins]
        + [pl.BlockSpec((KH * KW, c, Cout), lambda n, r: (0, 0, 0)) for c in cins]
        + [pl.BlockSpec((1, Cout), lambda n, r: (0, 0))]
    )

    # Scoped-VMEM sized from the actual resident footprint (double-buffered).
    blk_bytes = (sum(Hp * Wp * c * 2 for c in cins)
                 + sum(KH * KW * c * Cout * 2 for c in cins)
                 + tr * Wo * Cout * 2)
    vmem = int(max(32 * 1024 * 1024,
                   min(2 * blk_bytes + 8 * 1024 * 1024, 96 * 1024 * 1024)))

    kernel = functools.partial(_conv_parts_kernel, cins=tuple(cins), KH=KH, KW=KW,
                               Wo=Wo, tr=tr, dil=dil, slope=slope)
    return pl.pallas_call(
        kernel,
        out_shape=jax.ShapeDtypeStruct((N, Ho, Wo, Cout), out_dtype),
        grid_spec=pltpu.PrefetchScalarGridSpec(
            num_scalar_prefetch=0,
            grid=(N, Ho // tr),
            in_specs=in_specs,
            out_specs=pl.BlockSpec((1, tr, Wo, Cout), lambda n, r: (n, r, 0, 0)),
            scratch_shapes=[pltpu.VMEM((tr * Wo, Cout), jnp.float32)],
        ),
        compiler_params=pltpu.CompilerParams(
            dimension_semantics=("parallel", "parallel"),
            vmem_limit_bytes=vmem),
    )(*parts, *w_parts, b2)


# ----------------------------------------------------------------------------
# Pallas kernel 2: plain GEMM + bias + optional LeakyReLU (only for the six
# stride-2 extractor entry convs; K = 9*Cin is kept unpadded, single K block).
# ----------------------------------------------------------------------------
def _gemm_bias_act_kernel(x_ref, w_ref, b_ref, o_ref, *, slope):
    y = jnp.dot(x_ref[...], w_ref[...], preferred_element_type=jnp.float32)
    y = y + b_ref[...]
    if slope is not None:
        y = jnp.where(y >= 0.0, y, y * slope)
    o_ref[...] = y.astype(o_ref.dtype)


def matmul_bias_act(x, w, b, slope=None, out_dtype=jnp.bfloat16):
    """x: (M, K), w: (K, N), b: (N,) -> (M, N); bf16 operands, f32 accumulate."""
    M, K = x.shape
    Nc = w.shape[1]
    Np = _round_up(Nc, 128)
    tm = min(1024, _round_up(M, 8))
    Mp = _round_up(M, tm)
    xp = jnp.pad(x.astype(jnp.bfloat16), ((0, Mp - M), (0, 0)))
    wp = jnp.pad(w.astype(jnp.bfloat16), ((0, 0), (0, Np - Nc)))
    bp = jnp.pad(b.astype(jnp.float32), (0, Np - Nc)).reshape(1, Np)
    out = pl.pallas_call(
        functools.partial(_gemm_bias_act_kernel, slope=slope),
        out_shape=jax.ShapeDtypeStruct((Mp, Np), out_dtype),
        grid_spec=pltpu.PrefetchScalarGridSpec(
            num_scalar_prefetch=0,
            grid=(Mp // tm,),
            in_specs=[
                pl.BlockSpec((tm, K), lambda i: (i, 0)),
                pl.BlockSpec((K, Np), lambda i: (0, 0)),      # weights resident
                pl.BlockSpec((1, Np), lambda i: (0, 0)),
            ],
            out_specs=pl.BlockSpec((tm, Np), lambda i: (i, 0)),
        ),
        compiler_params=pltpu.CompilerParams(
            dimension_semantics=("parallel",),
            vmem_limit_bytes=32 * 1024 * 1024),
    )(xp, wp, bp)
    return out[:M, :Nc]


# ----------------------------------------------------------------------------
# Conv2d dispatcher
# ----------------------------------------------------------------------------
def conv2d(x, w, b, stride=1, padding=1, dilation=1, slope=0.1, out_dtype=jnp.bfloat16):
    """x: (N,H,W,Cin), w: (KH,KW,Cin,Cout), b: (Cout,)."""
    N, H, W, Cin = x.shape
    KH, KW, _, Cout = w.shape
    if stride == 1:
        xp = jnp.pad(x.astype(jnp.bfloat16),
                     ((0, 0), (padding, padding), (padding, padding), (0, 0)))
        return conv2d_parts([xp], w, b, KH=KH, KW=KW, dil=dilation,
                            slope=slope, out_dtype=out_dtype)

    # stride-2 (extractor entry convs only, dilation == 1): im2col + GEMM.
    Hp, Wp = H + 2 * padding, W + 2 * padding
    Ho = (Hp - dilation * (KH - 1) - 1) // stride + 1
    Wo = (Wp - dilation * (KW - 1) - 1) // stride + 1
    xp = jnp.pad(x.astype(jnp.bfloat16),
                 ((0, 0), (padding, padding), (padding, padding), (0, 0)))
    cols = []
    for ky in range(KH):
        for kx in range(KW):
            y0, x0 = ky * dilation, kx * dilation
            cols.append(xp[:, y0:y0 + stride * (Ho - 1) + 1:stride,
                              x0:x0 + stride * (Wo - 1) + 1:stride, :])
    x2d = jnp.concatenate(cols, axis=-1).reshape(N * Ho * Wo, KH * KW * Cin)
    w2d = w.reshape(KH * KW * Cin, Cout)
    out = matmul_bias_act(x2d, w2d, b, slope=slope, out_dtype=out_dtype)
    return out.reshape(N, Ho, Wo, Cout)


# ----------------------------------------------------------------------------
# ConvTranspose2d(kernel=4, stride=2, padding=1) via the exact 2x2 four-phase
# decomposition: one 2x2 stride-1 conv emits 4*Cout phase channels, then a
# cheap pixel shuffle (no zero taps, no zero-interleaved input).
# ----------------------------------------------------------------------------
def conv_transpose2d(x, w, b, out_dtype=jnp.float32):
    N, H, W, Cin = x.shape
    Cout = w.shape[-1]
    sel = ((3, 1), (2, 0))          # phase -> (kernel row for input row m-?, m)
    w2 = jnp.zeros((2, 2, Cin, 2, 2, Cout), w.dtype)
    for py in range(2):
        for px in range(2):
            for a in range(2):
                for c in range(2):
                    w2 = w2.at[a, c, :, py, px, :].set(w[sel[py][a], sel[px][c]])
    w2 = w2.reshape(2, 2, Cin, 4 * Cout)
    b4 = jnp.tile(b, 4)
    xp = jnp.pad(x.astype(jnp.bfloat16), ((0, 0), (1, 1), (1, 1), (0, 0)))
    out2 = conv2d_parts([xp], w2, b4, KH=2, KW=2, dil=1, slope=None,
                        out_dtype=jnp.float32)                    # (N, H+1, W+1, 4*Cout)
    ph = out2.reshape(N, H + 1, W + 1, 2, 2, Cout)
    rows = []
    for py in range(2):
        cols = [ph[:, py:py + H, px:px + W, py, px, :] for px in range(2)]
        rows.append(jnp.stack(cols, axis=3))                      # (N, H, W, 2, C)
    out = jnp.stack(rows, axis=2)                                 # (N, H, 2, W, 2, C)
    return out.reshape(N, 2 * H, 2 * W, Cout).astype(out_dtype)


# ----------------------------------------------------------------------------
# Pallas kernel 3: correlation cost volume (mean over channels) + LeakyReLU.
# Padded `two` stays resident in VMEM (bf16); each di-group of 9 results is
# written straight into a VMEM scratch slab (no 81 live temporaries, no 81-way
# concat), then one dense (th, W, 81) store per tile.
# ----------------------------------------------------------------------------
def _corr_kernel(one_ref, two_ref, o_ref, scr_ref, *, th, W, nd, inv_c, slope):
    r0 = pl.program_id(1) * th
    one = one_ref[0]                                              # (th, W, C) bf16
    for di in range(nd):
        rows = two_ref[0, pl.ds(r0 + di, th)]                     # (th, W+2md, C)
        cols = []
        for dj in range(nd):
            prod = one * rows[:, dj:dj + W, :]
            cols.append(jnp.sum(prod, axis=-1, keepdims=True, dtype=jnp.float32))
        scr_ref[:, :, di * nd:(di + 1) * nd] = jnp.concatenate(cols, axis=-1) * inv_c
    res = scr_ref[...]
    o_ref[0] = jnp.where(res >= 0.0, res, res * slope).astype(o_ref.dtype)


def correlation(one, two, md=4, slope=0.1):
    """FunctionCorrelation(max_disp=4) + leaky_relu(0.1): (N,H,W,C)->(N,H,W,81) bf16."""
    N, H, W, C = one.shape
    nd = 2 * md + 1
    D = nd * nd
    one_b = one.astype(jnp.bfloat16)
    two_pad = jnp.pad(two.astype(jnp.bfloat16), ((0, 0), (md, md), (md, md), (0, 0)))
    th = next(c for c in (8, 4, 2, 1) if H % c == 0)
    blk_bytes = ((H + 2 * md) * (W + 2 * md) * C * 2 + th * W * C * 2 + th * W * D * 2)
    vmem = int(max(32 * 1024 * 1024,
                   min(2 * blk_bytes + 8 * 1024 * 1024, 96 * 1024 * 1024)))
    kernel = functools.partial(_corr_kernel, th=th, W=W, nd=nd, inv_c=1.0 / C, slope=slope)
    return pl.pallas_call(
        kernel,
        out_shape=jax.ShapeDtypeStruct((N, H, W, D), jnp.bfloat16),
        grid_spec=pltpu.PrefetchScalarGridSpec(
            num_scalar_prefetch=0,
            grid=(N, H // th),
            in_specs=[
                pl.BlockSpec((1, th, W, C), lambda n, r: (n, r, 0, 0)),
                pl.BlockSpec((1, H + 2 * md, W + 2 * md, C), lambda n, r: (n, 0, 0, 0)),
            ],
            out_specs=pl.BlockSpec((1, th, W, D), lambda n, r: (n, r, 0, 0)),
            scratch_shapes=[pltpu.VMEM((th, W, D), jnp.float32)],
        ),
        compiler_params=pltpu.CompilerParams(
            dimension_semantics=("parallel", "parallel"),
            vmem_limit_bytes=vmem),
    )(one_b, two_pad)


# ----------------------------------------------------------------------------
# backwarp (grid_sample bilinear, zeros padding, align_corners=True)
# ----------------------------------------------------------------------------
# TODO(synk): grid_sample's data-dependent gather has no clean Pallas TPU mapping;
# implemented with plain JAX gathers.
def backwarp(ten_input, ten_flow):
    N, H, W, C = ten_input.shape
    gx = jnp.linspace(-1.0, 1.0, W)
    gy = jnp.linspace(-1.0, 1.0, H)
    base_x = jnp.broadcast_to(gx[None, None, :], (N, H, W))
    base_y = jnp.broadcast_to(gy[None, :, None], (N, H, W))
    fx = ten_flow[..., 0] * (2.0 / (W - 1.0))
    fy = ten_flow[..., 1] * (2.0 / (H - 1.0))
    px = (base_x + fx + 1.0) * 0.5 * (W - 1)
    py = (base_y + fy + 1.0) * 0.5 * (H - 1)

    inp = jnp.concatenate([ten_input, jnp.ones((N, H, W, 1), ten_input.dtype)], axis=-1)
    flat = inp.reshape(N, H * W, C + 1)

    x0 = jnp.floor(px)
    y0 = jnp.floor(py)
    x1 = x0 + 1.0
    y1 = y0 + 1.0
    wx1 = px - x0
    wx0 = 1.0 - wx1
    wy1 = py - y0
    wy0 = 1.0 - wy1

    def gather(yy, xx):
        yi = yy.astype(jnp.int32)
        xi = xx.astype(jnp.int32)
        valid = ((yi >= 0) & (yi < H) & (xi >= 0) & (xi < W)).astype(jnp.float32)
        yc = jnp.clip(yi, 0, H - 1)
        xc = jnp.clip(xi, 0, W - 1)
        idx = (yc * W + xc).reshape(N, H * W, 1)
        vals = jnp.take_along_axis(flat, idx, axis=1).reshape(N, H, W, C + 1)
        return vals.astype(jnp.float32) * valid[..., None]

    out = (gather(y0, x0) * (wy0 * wx0)[..., None] +
           gather(y0, x1) * (wy0 * wx1)[..., None] +
           gather(y1, x0) * (wy1 * wx0)[..., None] +
           gather(y1, x1) * (wy1 * wx1)[..., None])

    mask = out[..., -1:]
    mask = jnp.where(mask > 0.999, 1.0, 0.0)
    return out[..., :-1] * mask


# ----------------------------------------------------------------------------
# Parameter initialization (deterministic, synthetic)
# ----------------------------------------------------------------------------
class KeyGen:
    def __init__(self, seed):
        self.key = jax.random.PRNGKey(seed)

    def __call__(self):
        self.key, sub = jax.random.split(self.key)
        return sub


def init_conv(kg, kh, kw, cin, cout):
    fan_in = kh * kw * cin
    w = jax.random.normal(kg(), (kh, kw, cin, cout), jnp.float32) * (0.5 / math.sqrt(fan_in))
    b = jax.random.normal(kg(), (cout,), jnp.float32) * 0.01
    return w, b


INT_CURRENT = {6: 81, 5: 81 + 128 + 2 + 2, 4: 81 + 96 + 2 + 2,
               3: 81 + 64 + 2 + 2, 2: 81 + 32 + 2 + 2}
FLT_BACKWARP = {6: None, 5: 0.625, 4: 1.25, 3: 2.5, 2: 5.0}


def init_params(seed=0):
    kg = KeyGen(seed)
    p = {}
    ext_channels = [(3, 16), (16, 32), (32, 64), (64, 96), (96, 128), (128, 196)]
    ext = []
    for cin, cout in ext_channels:
        ext.append([init_conv(kg, 3, 3, cin, cout),
                    init_conv(kg, 3, 3, cout, cout),
                    init_conv(kg, 3, 3, cout, cout)])
    p['ext'] = ext
    dec = {}
    for lvl in [6, 5, 4, 3, 2]:
        d = {}
        cur = INT_CURRENT[lvl]
        if lvl < 6:
            prev_feat = INT_CURRENT[lvl + 1] + 128 + 128 + 96 + 64 + 32
            d['upflow'] = init_conv(kg, 4, 4, 2, 2)
            d['upfeat'] = init_conv(kg, 4, 4, prev_feat, 2)
        d['c1'] = init_conv(kg, 3, 3, cur, 128)
        d['c2'] = init_conv(kg, 3, 3, cur + 128, 128)
        d['c3'] = init_conv(kg, 3, 3, cur + 256, 96)
        d['c4'] = init_conv(kg, 3, 3, cur + 352, 64)
        d['c5'] = init_conv(kg, 3, 3, cur + 416, 32)
        d['c6'] = init_conv(kg, 3, 3, cur + 448, 2)
        dec[lvl] = d
    p['dec'] = dec
    rin = 81 + 32 + 2 + 2 + 128 + 128 + 96 + 64 + 32
    specs = [(rin, 128, 1), (128, 128, 2), (128, 128, 4), (128, 96, 8),
             (96, 64, 16), (64, 32, 1), (32, 2, 1)]
    p['ref'] = [(init_conv(kg, 3, 3, ci, co), dil) for ci, co, dil in specs]
    return p


# ----------------------------------------------------------------------------
# Network forward
# ----------------------------------------------------------------------------
def extractor_forward(ext_params, x):
    feats = []
    h = x
    for (w0, b0), (w1, b1), (w2, b2) in ext_params:
        h = conv2d(h, w0, b0, stride=2, padding=1, slope=0.1)
        h = conv2d(h, w1, b1, stride=1, padding=1, slope=0.1)
        h = conv2d(h, w2, b2, stride=1, padding=1, slope=0.1)
        feats.append(h)
    return feats


def _pad1(t):
    return jnp.pad(t.astype(jnp.bfloat16), ((0, 0), (1, 1), (1, 1), (0, 0)))


def decoder_forward(d, one, two, prev, flt):
    # Channel order inside feat is [vol, one, upflow, upfeat, c1..c5] (the reference
    # prepends instead); with synthetic weights this is a consistent relabeling.
    if prev is None:
        vol = correlation(one, two)                               # LeakyReLU fused
        parts = [vol]
    else:
        upflow = conv_transpose2d(prev['flow'], *d['upflow'])     # f32 (N,H,W,2)
        upfeat = conv_transpose2d(prev['feat'], *d['upfeat'])     # f32 (N,H,W,2)
        warped = backwarp(two, upflow * flt)
        vol = correlation(one, warped)
        parts = [vol, one, upflow, upfeat]

    padded_parts = [_pad1(t) for t in parts]
    for name in ['c1', 'c2', 'c3', 'c4', 'c5']:
        w, bb = d[name]
        out = conv2d_parts(padded_parts, w, bb, KH=3, KW=3, dil=1, slope=0.1)
        parts.append(out)
        padded_parts.append(_pad1(out))
    w6, b6 = d['c6']
    flow = conv2d_parts(padded_parts, w6, b6, KH=3, KW=3, dil=1, slope=None,
                        out_dtype=jnp.float32)
    feat = jnp.concatenate([p.astype(jnp.bfloat16) for p in parts], axis=-1)
    return {'flow': flow, 'feat': feat}


def refiner_forward(ref_params, feat):
    h = feat
    n = len(ref_params)
    for i, ((w, b), dil) in enumerate(ref_params):
        last = (i == n - 1)
        h = conv2d(h, w, b, stride=1, padding=dil, dilation=dil,
                   slope=None if last else 0.1,
                   out_dtype=jnp.float32 if last else jnp.bfloat16)
    return h


def network_forward(params, img1, img2):
    """img1, img2: (N, H, W, 3) with H, W multiples of 64. Returns (N, H/4, W/4, 2)."""
    f1 = extractor_forward(params['ext'], img1)
    f2 = extractor_forward(params['ext'], img2)
    est = None
    for lvl, idx in [(6, 5), (5, 4), (4, 3), (3, 2), (2, 1)]:
        est = decoder_forward(params['dec'][lvl], f1[idx], f2[idx], est, FLT_BACKWARP[lvl])
    refined = refiner_forward(params['ref'], est['feat'])
    return (est['flow'] + refined) * 20.0


# ----------------------------------------------------------------------------
if __name__ == "__main__":
    key = jax.random.PRNGKey(0)
    k1, k2 = jax.random.split(key)
    img1 = jax.random.uniform(k1, (1, 64, 64, 3), jnp.float32)
    img2 = jax.random.uniform(k2, (1, 64, 64, 3), jnp.float32)

    params = init_params(0)
    flow = network_forward(params, img1, img2)
    flow = jax.block_until_ready(flow)

    assert flow.shape == (1, 16, 16, 2), flow.shape
    assert bool(jnp.all(jnp.isfinite(flow)))
    print("KERNEL_OK")
</pallas_src>

<mosaic_0001>
module attributes {stable_mosaic.version = 11 : i64} {
  func.func @_gemm_bias_act_kernel(%arg0: i32, %arg1: memref<1024x27xbf16, #tpu.memory_space<vmem>>, %arg2: memref<27x128xbf16, #tpu.memory_space<vmem>>, %arg3: memref<1x128xf32, #tpu.memory_space<vmem>>, %arg4: memref<1024x128xbf16, #tpu.memory_space<vmem>>) attributes {dimension_semantics = [#tpu.dimension_semantics<parallel>], iteration_bounds = array<i64: 1>, scalar_prefetch = 0 : i64, scratch_operands = 0 : i64, tpu.core_type = #tpu.core_type<tc>, window_params = [{transform_indices = @transform_0, window_bounds = array<i64: 1024, 27>}, {pipeline_mode = #tpu.pipeline_mode<synchronous>, transform_indices = @transform_1, window_bounds = array<i64: 27, 128>}, {pipeline_mode = #tpu.pipeline_mode<synchronous>, transform_indices = @transform_2, window_bounds = array<i64: 1, 128>}, {transform_indices = @transform_3, window_bounds = array<i64: 1024, 128>}]} {
    %c0 = arith.constant 0 : index
    %c0_0 = arith.constant 0 : index
    %0 = vector.load %arg1[%c0, %c0_0] : memref<1024x27xbf16, #tpu.memory_space<vmem>>, vector<1024x27xbf16>
    %c0_1 = arith.constant 0 : index
    %c0_2 = arith.constant 0 : index
    %1 = vector.load %arg2[%c0_1, %c0_2] : memref<27x128xbf16, #tpu.memory_space<vmem>>, vector<27x128xbf16>
    %cst = arith.constant dense<0.000000e+00> : vector<1024x128xf32>
    %2 = tpu.matmul %0, %1, %cst {dimension_numbers = #tpu.dot_dimension_numbers<[1], [0], [0], [1], [0, 0, 1, 1], [], []>} : vector<1024x27xbf16>, vector<27x128xbf16>, vector<1024x128xf32> -> vector<1024x128xf32>
    %c0_3 = arith.constant 0 : index
    %c0_4 = arith.constant 0 : index
    %3 = vector.load %arg3[%c0_3, %c0_4] : memref<1x128xf32, #tpu.memory_space<vmem>>, vector<1x128xf32>
    %4 = vector.broadcast %3 : vector<1x128xf32> to vector<1024x128xf32>
    %5 = arith.addf %2, %4 : vector<1024x128xf32>
    %cst_5 = arith.constant 0.000000e+00 : f32
    %6 = vector.broadcast %cst_5 : f32 to vector<1024x128xf32>
    %7 = arith.cmpf oge, %5, %6 : vector<1024x128xf32>
    %cst_6 = arith.constant 1.000000e-01 : f32
    %8 = vector.broadcast %cst_6 : f32 to vector<1024x128xf32>
    %9 = arith.mulf %5, %8 : vector<1024x128xf32>
    %10 = arith.select %7, %5, %9 : vector<1024x128xi1>, vector<1024x128xf32>
    %11 = arith.truncf %10 : vector<1024x128xf32> to vector<1024x128xbf16>
    %c0_7 = arith.constant 0 : index
    %c0_8 = arith.constant 0 : index
    %12 = vector.load %arg4[%c0_7, %c0_8] : memref<1024x128xbf16, #tpu.memory_space<vmem>>, vector<1024x128xbf16>
    tpu.vector_store %arg4[%c0_7, %c0_8], %11 {strides = array<i32>} : memref<1024x128xbf16, #tpu.memory_space<vmem>>, vector<1024x128xbf16>,
    return
  }
  func.func @transform_0(%arg0: i32) -> (i32, i32) {
    %c0_i32 = arith.constant 0 : i32
    %c0_i32_0 = arith.constant 0 : i32
    return %arg0, %c0_i32 : i32, i32
  }
  func.func @transform_1(%arg0: i32) -> (i32, i32) {
    %c0_i32 = arith.constant 0 : i32
    %c0_i32_0 = arith.constant 0 : i32
    %c0_i32_1 = arith.constant 0 : i32
    return %c0_i32, %c0_i32_0 : i32, i32
  }
  func.func @transform_2(%arg0: i32) -> (i32, i32) {
    %c0_i32 = arith.constant 0 : i32
    %c0_i32_0 = arith.constant 0 : i32
    %c0_i32_1 = arith.constant 0 : i32
    return %c0_i32, %c0_i32_0 : i32, i32
  }
  func.func @transform_3(%arg0: i32) -> (i32, i32) {
    %c0_i32 = arith.constant 0 : i32
    %c0_i32_0 = arith.constant 0 : i32
    return %arg0, %c0_i32 : i32, i32
  }
}

</mosaic_0001>

<bundles_post_ra>
// kernel: tpu_custom_call.1
= control target key start
LH: loop header
LB: loop body
LE: loop exit
PB: predicated region body
PF: predicated region fallthrough
CT: control target
= control target key end

     0   :  { %vm679_vm0 = vcmask 1044480   ;;  %vm680_vm1 = vcmask 1045504   ;;  %v3338_v2 = vmov 65535   ;;  %vm486_vm2 = vcmask 220160   ;;  %s3910_s0 = inlined_call_operand.vmem [shape: bf16[1024,27], index: 0, kind: input, shape index: {}]   ;;  %s3911_s1 = inlined_call_operand.vmem [shape: bf16[27,128], index: 1, kind: input, shape index: {}]   ;;  %s3912_s2 = inlined_call_operand.vmem [shape: f32[1,128], index: 2, kind: input, shape index: {}]   ;;  %s3913_s3 = inlined_call_operand.hbm [shape: bf16[1024,128], index: 3, kind: output, shape index: {}]  }
   0x1   :  { %v3247_v0 = vld [vmem:[%s3911_s1] sm:$0xff]   ;;  %v3248_v1 = vld [vmem:[%s3911_s1 + $0x8] sm:$0x3f]   ;;  %v681_v3 = vsel %vm679_vm0, 4294967295, %v3338_v2  ;;  %v3253_v10 = vld [vmem:[%s3910_s0 + $0x10] sm:$0xff]  }
   0x2   :  { %3107 = vmatprep.subr.bf16.mxu0 %v3247_v0  ;;  %3239 = vmatprep.subr.bf16.mxu1 %v3247_v0  ;;  %v3249_v4 = vld [vmem:[%s3910_s0] sm:$0xff]   ;;  %v682_v6 = vsel %vm680_vm1, %v681_v3, 0  ;;  %v3251_v8 = vld [vmem:[%s3910_s0 + $0x8] sm:$0xff]   ;;  %v3254_v11 = vld [vmem:[%s3910_s0 + $0x110] sm:$0xff]  }
   0x3   :  { %3108 = vmatpush3.bf16.msra.mxu0 %v3247_v0  ;;  %3241 = vmatpush3.bf16.msra.mxu1 %v3247_v0  ;;  %v3250_v5 = vld [vmem:[%s3910_s0 + $0x100] sm:$0xff]   ;;  %v684_v7 = vand.u32 %v3248_v1, %v682_v6  ;;  %v3252_v9 = vld [vmem:[%s3910_s0 + $0x108] sm:$0xff]   ;;  %v3255_v12 = vld [vmem:[%s3910_s0 + $0x18] sm:$0xff]  }
   0x4   :  { %3111 = vmatprep.mubr.msk.bf16.mxu0 %vm486_vm2, %v3249_v4  ;;  %3175 = vmatprep.mubr.msk.bf16.mxu1 %vm486_vm2, %v3250_v5  ;;  %v3256_v13 = vld [vmem:[%s3910_s0 + $0x118] sm:$0xff]   ;;  %v3257_v14 = vld [vmem:[%s3910_s0 + $0x20] sm:$0xff]   ;;  %v3259_v16 = vld [vmem:[%s3910_s0 + $0x28] sm:$0xff]  }
   0x5   :  { %3109 = vmatprep.subr.bf16.mxu0 %v684_v7  ;;  %3240 = vmatprep.subr.bf16.mxu1 %v684_v7  ;;  %v3258_v15 = vld [vmem:[%s3910_s0 + $0x120] sm:$0xff]   ;;  %v3260_v17 = vld [vmem:[%s3910_s0 + $0x128] sm:$0xff]   ;;  %v3261_v18 = vld [vmem:[%s3910_s0 + $0x30] sm:$0xff]  }
   0x6   :  { %v3262_v19 = vld [vmem:[%s3910_s0 + $0x130] sm:$0xff]   ;;  %v3263_v20 = vld [vmem:[%s3910_s0 + $0x38] sm:$0xff]   ;;  %v3265_v22 = vld [vmem:[%s3910_s0 + $0x40] sm:$0xff]  }
   0x7   :  { %3110 = vmatpush3.bf16.msra.mxu0 %v684_v7  ;;  %3242 = vmatpush3.bf16.msra.mxu1 %v684_v7  ;;  %v3264_v21 = vld [vmem:[%s3910_s0 + $0x138] sm:$0xff]   ;;  %v3266_v23 = vld [vmem:[%s3910_s0 + $0x140] sm:$0xff]   ;;  %v3267_v24 = vld [vmem:[%s3910_s0 + $0x48] sm:$0xff]  }
   0x8   :  { %v3268_v25 = vld [vmem:[%s3910_s0 + $0x148] sm:$0xff]   ;;  %v3269_v26 = vld [vmem:[%s3910_s0 + $0x50] sm:$0xff]   ;;  %v3271_v28 = vld [vmem:[%s3910_s0 + $0x58] sm:$0xff]  }
   0x9   :  { %v3270_v27 = vld [vmem:[%s3910_s0 + $0x150] sm:$0xff]   ;;  %v3272_v29 = vld [vmem:[%s3910_s0 + $0x158] sm:$0xff]   ;;  %v3273_v30 = vld [vmem:[%s3910_s0 + $0x60] sm:$0xff]  }
   0xa   :  { %3112 = vmatmul.mubr.msk.bf16.vlgmr.msra.gmra.mrb[0].mxu0 %vm486_vm2, %v3251_v8  ;;  %3176 = vmatmul.mubr.msk.bf16.vlgmr.msra.gmra.mrb[0].mxu1 %vm486_vm2, %v3252_v9  ;;  %v3274_v31 = vld [vmem:[%s3910_s0 + $0x160] sm:$0xff]   ;;  %v3275_v32 = vld [vmem:[%s3910_s0 + $0x68] sm:$0xff]   ;;  %v3277_v34 = vld [vmem:[%s3910_s0 + $0x70] sm:$0xff]  }
   0xb   :  { %3115 = vmatprep.mubr.msk.bf16.mxu0 %vm486_vm2, %v3253_v10  ;;  %3179 = vmatprep.mubr.msk.bf16.mxu1 %vm486_vm2, %v3254_v11  ;;  %v3276_v33 = vld [vmem:[%s3910_s0 + $0x168] sm:$0xff]   ;;  %v3278_v35 = vld [vmem:[%s3910_s0 + $0x170] sm:$0xff]   ;;  %v3279_v36 = vld [vmem:[%s3910_s0 + $0x78] sm:$0xff]  }
   0xc   :  { %v3280_v37 = vld [vmem:[%s3910_s0 + $0x178] sm:$0xff]   ;;  %v3281_v38 = vld [vmem:[%s3910_s0 + $0x80] sm:$0xff]  }
   0xd   :  { %v3282_v39 = vld [vmem:[%s3910_s0 + $0x180] sm:$0xff]  }
  0x12   :  { %3116 = vmatmul.mubr.msk.bf16.gmra.mrb[4].mxu0 %vm486_vm2, %v3255_v12  ;;  %3180 = vmatmul.mubr.msk.bf16.gmra.mrb[4].mxu1 %vm486_vm2, %v3256_v13 }
  0x13   :  { %3119 = vmatprep.mubr.msk.bf16.mxu0 %vm486_vm2, %v3257_v14  ;;  %3183 = vmatprep.mubr.msk.bf16.mxu1 %vm486_vm2, %v3258_v15 }
  0x1a   :  { %3120 = vmatmul.mubr.msk.bf16.gmra.mrb[8].mxu0 %vm486_vm2, %v3259_v16  ;;  %3184 = vmatmul.mubr.msk.bf16.gmra.mrb[8].mxu1 %vm486_vm2, %v3260_v17 }
  0x1b   :  { %3123 = vmatprep.mubr.msk.bf16.mxu0 %vm486_vm2, %v3261_v18  ;;  %3187 = vmatprep.mubr.msk.bf16.mxu1 %vm486_vm2, %v3262_v19 }
  0x22   :  { %3124 = vmatmul.mubr.msk.bf16.gmra.mrb[12].mxu0 %vm486_vm2, %v3263_v20  ;;  %3188 = vmatmul.mubr.msk.bf16.gmra.mrb[12].mxu1 %vm486_vm2, %v3264_v21 }
  0x23   :  { %3127 = vmatprep.mubr.msk.bf16.mxu0 %vm486_vm2, %v3265_v22  ;;  %3191 = vmatprep.mubr.msk.bf16.mxu1 %vm486_vm2, %v3266_v23 }
  0x2a   :  { %3128 = vmatmul.mubr.msk.bf16.gmra.mrb[16].mxu0 %vm486_vm2, %v3267_v24  ;;  %3192 = vmatmul.mubr.msk.bf16.gmra.mrb[16].mxu1 %vm486_vm2, %v3268_v25 }
  0x2b   :  { %3131 = vmatprep.mubr.msk.bf16.mxu0 %vm486_vm2, %v3269_v26  ;;  %3195 = vmatprep.mubr.msk.bf16.mxu1 %vm486_vm2, %v3270_v27 }
  0x32   :  { %3132 = vmatmul.mubr.msk.bf16.gmra.mrb[20].mxu0 %vm486_vm2, %v3271_v28  ;;  %3196 = vmatmul.mubr.msk.bf16.gmra.mrb[20].mxu1 %vm486_vm2, %v3272_v29 }
  0x33   :  { %3135 = vmatprep.mubr.msk.bf16.mxu0 %vm486_vm2, %v3273_v30  ;;  %3199 = vmatprep.mubr.msk.bf16.mxu1 %vm486_vm2, %v3274_v31 }
  0x3a   :  { %3136 = vmatmul.mubr.msk.bf16.gmra.mrb[24].mxu0 %vm486_vm2, %v3275_v32  ;;  %3200 = vmatmul.mubr.msk.bf16.gmra.mrb[24].mxu1 %vm486_vm2, %v3276_v33 }
  0x3b   :  { %3139 = vmatprep.mubr.msk.bf16.mxu0 %vm486_vm2, %v3277_v34  ;;  %3203 = vmatprep.mubr.msk.bf16.mxu1 %vm486_vm2, %v3278_v35 }
  0x3c   :  { %8 = vsyncpa [#allocation3], 0  ;;  %v3283_v40 = vld [vmem:[%s3910_s0 + $0x88] sm:$0xff]   ;;  %v3285_v42 = vld [vmem:[%s3910_s0 + $0x90] sm:$0xff]  }
  0x3d   :  { %v3284_v41 = vld [vmem:[%s3910_s0 + $0x188] sm:$0xff]   ;;  %v3286_v43 = vld [vmem:[%s3910_s0 + $0x190] sm:$0xff]   ;;  %v3287_v44 = vld [vmem:[%s3910_s0 + $0x98] sm:$0xff]  }
  0x3e   :  { %v3288_v45 = vld [vmem:[%s3910_s0 + $0x198] sm:$0xff]   ;;  %v3289_v46 = vld [vmem:[%s3910_s0 + $0xa0] sm:$0xff]   ;;  %v3291_v48 = vld [vmem:[%s3910_s0 + $0xa8] sm:$0xff]  }
  0x3f   :  { %v3290_v47 = vld [vmem:[%s3910_s0 + $0x1a0] sm:$0xff]   ;;  %v3292_v49 = vld [vmem:[%s3910_s0 + $0x1a8] sm:$0xff]   ;;  %v3293_v50 = vld [vmem:[%s3910_s0 + $0xb0] sm:$0xff]  }
  0x40   :  { %v3294_v51 = vld [vmem:[%s3910_s0 + $0x1b0] sm:$0xff]   ;;  %v3295_v52 = vld [vmem:[%s3910_s0 + $0xb8] sm:$0xff]   ;;  %v3297_v54 = vld [vmem:[%s3910_s0 + $0xc0] sm:$0xff]  }
  0x41   :  { %v3296_v53 = vld [vmem:[%s3910_s0 + $0x1b8] sm:$0xff]   ;;  %v3298_v55 = vld [vmem:[%s3910_s0 + $0x1c0] sm:$0xff]   ;;  %v3299_v56 = vld [vmem:[%s3910_s0 + $0xc8] sm:$0xff]  }
  0x42   :  { %3140 = vmatmul.mubr.msk.bf16.gmra.mrb[28].mxu0 %vm486_vm2, %v3279_v36  ;;  %3204 = vmatmul.mubr.msk.bf16.gmra.mrb[28].mxu1 %vm486_vm2, %v3280_v37  ;;  %v3300_v57 = vld [vmem:[%s3910_s0 + $0x1c8] sm:$0xff]   ;;  %v3301_v58 = vld [vmem:[%s3910_s0 + $0xd0] sm:$0xff]   ;;  %v3303_v60 = vld [vmem:[%s3910_s0 + $0xd8] sm:$0xff]  }
  0x43   :  { %3143 = vmatprep.mubr.msk.bf16.mxu0 %vm486_vm2, %v3281_v38  ;;  %3207 = vmatprep.mubr.msk.bf16.mxu1 %vm486_vm2, %v3282_v39  ;;  %v3302_v59 = vld [vmem:[%s3910_s0 + $0x1d0] sm:$0xff]   ;;  %v3304_v61 = vld [vmem:[%s3910_s0 + $0x1d8] sm:$0xff]   ;;  %v3305_v62 = vld [vmem:[%s3910_s0 + $0xe0] sm:$0xff]  }
  0x44   :  { %v3306_v63 = vld [vmem:[%s3910_s0 + $0x1e0] sm:$0xff]   ;;  %v3307_v0 = vld [vmem:[%s3910_s0 + $0xe8] sm:$0xff]   ;;  %v3309_v2 = vld [vmem:[%s3910_s0 + $0xf0] sm:$0xff]  }
  0x45   :  { %v3308_v1 = vld [vmem:[%s3910_s0 + $0x1e8] sm:$0xff]   ;;  %v3310_v3 = vld [vmem:[%s3910_s0 + $0x1f0] sm:$0xff]   ;;  %v3311_v4 = vld [vmem:[%s3910_s0 + $0xf8] sm:$0xff]  }
  0x46   :  { %v3312_v5 = vld [vmem:[%s3910_s0 + $0x1f8] sm:$0xff]   ;;  %v3627_v6 = vld [vmem:[%s3912_s2] ss:$0 sm:$0xff] }
  0x4a   :  { %3144 = vmatmul.mubr.msk.bf16.gmra.mrb[32].mxu0 %vm486_vm2, %v3283_v40  ;;  %3208 = vmatmul.mubr.msk.bf16.gmra.mrb[32].mxu1 %vm486_vm2, %v3284_v41 }
  0x4b   :  { %3147 = vmatprep.mubr.msk.bf16.mxu0 %vm486_vm2, %v3285_v42  ;;  %3211 = vmatprep.mubr.msk.bf16.mxu1 %vm486_vm2, %v3286_v43 }
  0x52   :  { %3148 = vmatmul.mubr.msk.bf16.gmra.mrb[36].mxu0 %vm486_vm2, %v3287_v44  ;;  %3212 = vmatmul.mubr.msk.bf16.gmra.mrb[36].mxu1 %vm486_vm2, %v3288_v45 }
  0x53   :  { %3151 = vmatprep.mubr.msk.bf16.mxu0 %vm486_vm2, %v3289_v46  ;;  %3215 = vmatprep.mubr.msk.bf16.mxu1 %vm486_vm2, %v3290_v47 }
  0x5a   :  { %3152 = vmatmul.mubr.msk.bf16.gmra.mrb[40].mxu0 %vm486_vm2, %v3291_v48  ;;  %3216 = vmatmul.mubr.msk.bf16.gmra.mrb[40].mxu1 %vm486_vm2, %v3292_v49 }
  0x5b   :  { %3155 = vmatprep.mubr.msk.bf16.mxu0 %vm486_vm2, %v3293_v50  ;;  %3219 = vmatprep.mubr.msk.bf16.mxu1 %vm486_vm2, %v3294_v51 }
  0x62   :  { %3156 = vmatmul.mubr.msk.bf16.gmra.mrb[44].mxu0 %vm486_vm2, %v3295_v52  ;;  %3220 = vmatmul.mubr.msk.bf16.gmra.mrb[44].mxu1 %vm486_vm2, %v3296_v53 }
  0x63   :  { %3159 = vmatprep.mubr.msk.bf16.mxu0 %vm486_vm2, %v3297_v54  ;;  %3223 = vmatprep.mubr.msk.bf16.mxu1 %vm486_vm2, %v3298_v55 }
  0x6a   :  { %3160 = vmatmul.mubr.msk.bf16.gmra.mrb[48].mxu0 %vm486_vm2, %v3299_v56  ;;  %3224 = vmatmul.mubr.msk.bf16.gmra.mrb[48].mxu1 %vm486_vm2, %v3300_v57 }
  0x6b   :  { %3163 = vmatprep.mubr.msk.bf16.mxu0 %vm486_vm2, %v3301_v58  ;;  %3227 = vmatprep.mubr.msk.bf16.mxu1 %vm486_vm2, %v3302_v59 }
  0x72   :  { %3164 = vmatmul.mubr.msk.bf16.gmra.mrb[52].mxu0 %vm486_vm2, %v3303_v60  ;;  %3228 = vmatmul.mubr.msk.bf16.gmra.mrb[52].mxu1 %vm486_vm2, %v3304_v61 }
  0x73   :  { %3167 = vmatprep.mubr.msk.bf16.mxu0 %vm486_vm2, %v3305_v62  ;;  %3231 = vmatprep.mubr.msk.bf16.mxu1 %vm486_vm2, %v3306_v63 }
  0x7a   :  { %3168 = vmatmul.mubr.msk.bf16.gmra.mrb[56].mxu0 %vm486_vm2, %v3307_v0  ;;  %3232 = vmatmul.mubr.msk.bf16.gmra.mrb[56].mxu1 %vm486_vm2, %v3308_v1 }
  0x7b   :  { %3171 = vmatprep.mubr.msk.bf16.mxu0 %vm486_vm2, %v3309_v2  ;;  %3235 = vmatprep.mubr.msk.bf16.mxu1 %vm486_vm2, %v3310_v3 }
  0x82   :  { %3172 = vmatmul.mubr.msk.bf16.gmra.mrb[60].mxu0 %vm486_vm2, %v3311_v4  ;;  %3236 = vmatmul.mubr.msk.bf16.gmra.mrb[60].mxu1 %vm486_vm2, %v3312_v5 }
  0xdd   :  { %v3113_v7 = vpop.f32.mrb[0].mxu0  ;;  %v3177_v8 = vpop.f32.mrb[0].mxu1 }
  0xde   :  { %v729_v9 = vadd.f32 %v3113_v7, %v3627_v6  ;;  %v985_v10 = vadd.f32 %v3177_v8, %v3627_v6  ;;  %v720_v11 = vpop.f32.mrb[1].mxu0  ;;  %v976_v12 = vpop.f32.mrb[1].mxu1 }
  0xdf   :  { %v721_v13 = vadd.f32 %v3627_v6, %v720_v11  ;;  %v977_v14 = vadd.f32 %v3627_v6, %v976_v12  ;;  %v3114_v15 = vpop.f32.mrb[2].mxu0  ;;  %v3178_v16 = vpop.f32.mrb[2].mxu1 }
  0xe0   :  { %vm1233_vm3 = vcmp.ge.f32.partialorder %v729_v9, 0.0  ;;  %v1361_v17 = vmul.f32 0.1, %v729_v9  ;;  %vm1297_vm4 = vcmp.ge.f32.partialorder %v985_v10, 0.0  ;;  %v1425_v18 = vmul.f32 0.1, %v985_v10 }
  0xe1   :  { %vm1231_vm5 = vcmp.ge.f32.partialorder %v721_v13, 0.0  ;;  %v1359_v19 = vmul.f32 0.1, %v721_v13  ;;  %vm1295_vm6 = vcmp.ge.f32.partialorder %v977_v14, 0.0  ;;  %v1423_v20 = vmul.f32 0.1, %v977_v14 }
  0xe2   :  { %v732_v21 = vadd.f32 %v3114_v15, %v3627_v6  ;;  %v988_v22 = vadd.f32 %v3178_v16, %v3627_v6  ;;  %v723_v23 = vpop.f32.mrb[3].mxu0  ;;  %v979_v24 = vpop.f32.mrb[3].mxu1  ;;  %v1489_v25 = vsel %vm1233_vm3, %v729_v9, %v1361_v17  ;;  %v1553_v26 = vsel %vm1297_vm4, %v985_v10, %v1425_v18 }
  0xe3   :  { %v724_v27 = vadd.f32 %v3627_v6, %v723_v23  ;;  %v980_v28 = vadd.f32 %v3627_v6, %v979_v24  ;;  %v1487_v33 = vsel %vm1231_vm5, %v721_v13, %v1359_v19  ;;  %v1551_v34 = vsel %vm1295_vm6, %v977_v14, %v1423_v20 }
  0xe4   :  { %vm1234_vm7 = vcmp.ge.f32.partialorder %v732_v21, 0.0  ;;  %v1362_v29 = vmul.f32 0.1, %v732_v21  ;;  %vm1298_vm8 = vcmp.ge.f32.partialorder %v988_v22, 0.0  ;;  %v1426_v30 = vmul.f32 0.1, %v988_v22 }
  0xe5   :  { %vm1232_vm9 = vcmp.ge.f32.partialorder %v724_v27, 0.0  ;;  %v1360_v31 = vmul.f32 0.1, %v724_v27  ;;  %vm1296_vm10 = vcmp.ge.f32.partialorder %v980_v28, 0.0  ;;  %v1424_v32 = vmul.f32 0.1, %v980_v28 }
  0xe6   :  { %v1490_v35 = vsel %vm1234_vm7, %v732_v21, %v1362_v29  ;;  %v1554_v36 = vsel %vm1298_vm8, %v988_v22, %v1426_v30  ;;  %v3117_v37 = vpop.f32.mrb[4].mxu0  ;;  %v3181_v38 = vpop.f32.mrb[4].mxu1 }
  0xe7   :  { %v2666_v39 = vpack.c.bf16 %v1490_v35, %v1489_v25  ;;  %v2826_v40 = vpack.c.bf16 %v1554_v36, %v1553_v26  ;;  %v1488_v41 = vsel %vm1232_vm9, %v724_v27, %v1360_v31  ;;  %v1552_v42 = vsel %vm1296_vm10, %v980_v28, %v1424_v32  ;;  %v736_v43 = vpop.f32.mrb[5].mxu0  ;;  %v992_v44 = vpop.f32.mrb[5].mxu1 }
  0xe8   :  { %v2661_v45 = vpack.c.bf16 %v1488_v41, %v1487_v33  ;;  %v2821_v46 = vpack.c.bf16 %v1552_v42, %v1551_v34  ;;  %v745_v47 = vadd.f32 %v3117_v37, %v3627_v6  ;;  %v1001_v48 = vadd.f32 %v3181_v38, %v3627_v6  ;;  %v3118_v49 = vpop.f32.mrb[6].mxu0  ;;  %v3182_v50 = vpop.f32.mrb[6].mxu1 }
  0xe9   :  { %2978 = vst [vmem:[#allocation2 + $0x8] sm:$0xff] %v2666_v39   ;;  %3010 = vst [vmem:[#allocation2 + $0x108] sm:$0xff] %v2826_v40   ;;  %v737_v51 = vadd.f32 %v3627_v6, %v736_v43  ;;  %v993_v52 = vadd.f32 %v3627_v6, %v992_v44  ;;  %v748_v53 = vadd.f32 %v3118_v49, %v3627_v6  ;;  %v739_v55 = vpop.f32.mrb[7].mxu0  ;;  %v995_v56 = vpop.f32.mrb[7].mxu1 }
  0xea   :  { %v1004_v54 = vadd.f32 %v3182_v50, %v3627_v6  ;;  %2662 = vst [vmem:[#allocation2] sm:$0xff] %v2661_v45   ;;  %3009 = vst [vmem:[#allocation2 + $0x100] sm:$0xff] %v2821_v46   ;;  %vm1237_vm11 = vcmp.ge.f32.partialorder %v745_v47, 0.0  ;;  %v1365_v57 = vmul.f32 0.1, %v745_v47  ;;  %vm1301_vm12 = vcmp.ge.f32.partialorder %v1001_v48, 0.0 }
  0xeb   :  { %v1429_v58 = vmul.f32 0.1, %v1001_v48  ;;  %vm1235_vm13 = vcmp.ge.f32.partialorder %v737_v51, 0.0  ;;  %v1363_v59 = vmul.f32 0.1, %v737_v51  ;;  %vm1299_vm14 = vcmp.ge.f32.partialorder %v993_v52, 0.0 }
  0xec   :  { %v1427_v60 = vmul.f32 0.1, %v993_v52  ;;  %v1493_v61 = vsel %vm1237_vm11, %v745_v47, %v1365_v57  ;;  %vm1238_vm15 = vcmp.ge.f32.partialorder %v748_v53, 0.0  ;;  %v1366_v63 = vmul.f32 0.1, %v748_v53 }
  0xed   :  { %v1557_v62 = vsel %vm1301_vm12, %v1001_v48, %v1429_v58  ;;  %v1491_v0 = vsel %vm1235_vm13, %v737_v51, %v1363_v59  ;;  %vm1302_vm0 = vcmp.ge.f32.partialorder %v1004_v54, 0.0  ;;  %v1430_v2 = vmul.f32 0.1, %v1004_v54  ;;  %v3121_v3 = vpop.f32.mrb[8].mxu0  ;;  %v3185_v4 = vpop.f32.mrb[8].mxu1 }
  0xee   :  { %v1555_v1 = vsel %vm1299_vm14, %v993_v52, %v1427_v60  ;;  %v1494_v5 = vsel %vm1238_vm15, %v748_v53, %v1366_v63  ;;  %v740_v7 = vadd.f32 %v3627_v6, %v739_v55  ;;  %v996_v8 = vadd.f32 %v3627_v6, %v995_v56  ;;  %v752_v10 = vpop.f32.mrb[9].mxu0  ;;  %v1008_v11 = vpop.f32.mrb[9].mxu1 }
  0xef   :  { %v761_v9 = vadd.f32 %v3121_v3, %v3627_v6  ;;  %v2676_v12 = vpack.c.bf16 %v1494_v5, %v1493_v61  ;;  %v1558_v13 = vsel %vm1302_vm0, %v1004_v54, %v1430_v2  ;;  %v1017_v14 = vadd.f32 %v3185_v4, %v3627_v6  ;;  %v3122_v16 = vpop.f32.mrb[10].mxu0  ;;  %v3186_v17 = vpop.f32.mrb[10].mxu1 }
  0xf0   :  { %v753_v15 = vadd.f32 %v3627_v6, %v752_v10  ;;  %v2836_v18 = vpack.c.bf16 %v1558_v13, %v1557_v62  ;;  %vm1236_vm1 = vcmp.ge.f32.partialorder %v740_v7, 0.0  ;;  %v1364_v19 = vmul.f32 0.1, %v740_v7  ;;  %v755_v20 = vpop.f32.mrb[11].mxu0  ;;  %v1011_v21 = vpop.f32.mrb[11].mxu1 }
  0xf1   :  { %vm1300_vm2 = vcmp.ge.f32.partialorder %v996_v8, 0.0  ;;  %2980 = vst [vmem:[#allocation2 + $0x18] sm:$0xff] %v2676_v12   ;;  %v1428_v22 = vmul.f32 0.1, %v996_v8  ;;  %vm1241_vm3 = vcmp.ge.f32.partialorder %v761_v9, 0.0  ;;  %vm1305_vm4 = vcmp.ge.f32.partialorder %v1017_v14, 0.0 }
  0xf2   :  { %v1369_v23 = vmul.f32 0.1, %v761_v9  ;;  %3012 = vst [vmem:[#allocation2 + $0x118] sm:$0xff] %v2836_v18   ;;  %v1492_v24 = vsel %vm1236_vm1, %v740_v7, %v1364_v19  ;;  %v1433_v25 = vmul.f32 0.1, %v1017_v14  ;;  %vm1239_vm5 = vcmp.ge.f32.partialorder %v753_v15, 0.0 }
  0xf3   :  { %v1367_v26 = vmul.f32 0.1, %v753_v15  ;;  %v2671_v27 = vpack.c.bf16 %v1492_v24, %v1491_v0  ;;  %v1556_v28 = vsel %vm1300_vm2, %v996_v8, %v1428_v22  ;;  %v1009_v30 = vadd.f32 %v3627_v6, %v1008_v11 }
  0xf4   :  { %v1497_v29 = vsel %vm1241_vm3, %v761_v9, %v1369_v23  ;;  %v2831_v31 = vpack.c.bf16 %v1556_v28, %v1555_v1  ;;  %v1561_v32 = vsel %vm1305_vm4, %v1017_v14, %v1433_v25  ;;  %v764_v34 = vadd.f32 %v3122_v16, %v3627_v6 }
  0xf5   :  { %v1495_v33 = vsel %vm1239_vm5, %v753_v15, %v1367_v26  ;;  %2979 = vst [vmem:[#allocation2 + $0x10] sm:$0xff] %v2671_v27   ;;  %vm1303_vm6 = vcmp.ge.f32.partialorder %v1009_v30, 0.0  ;;  %v1431_v35 = vmul.f32 0.1, %v1009_v30  ;;  %v1020_v36 = vadd.f32 %v3186_v17, %v3627_v6  ;;  %v3125_v38 = vpop.f32.mrb[12].mxu0  ;;  %v3189_v39 = vpop.f32.mrb[12].mxu1 }
  0xf6   :  { %v756_v37 = vadd.f32 %v3627_v6, %v755_v20  ;;  %3011 = vst [vmem:[#allocation2 + $0x110] sm:$0xff] %v2831_v31   ;;  %vm1242_vm7 = vcmp.ge.f32.partialorder %v764_v34, 0.0  ;;  %v1370_v40 = vmul.f32 0.1, %v764_v34  ;;  %v1012_v41 = vadd.f32 %v3627_v6, %v1011_v21  ;;  %v768_v43 = vpop.f32.mrb[13].mxu0  ;;  %v1024_v44 = vpop.f32.mrb[13].mxu1 }
  0xf7   :  { %v777_v42 = vadd.f32 %v3125_v38, %v3627_v6  ;;  %v1559_v45 = vsel %vm1303_vm6, %v1009_v30, %v1431_v35  ;;  %vm1306_vm8 = vcmp.ge.f32.partialorder %v1020_v36, 0.0  ;;  %v1434_v46 = vmul.f32 0.1, %v1020_v36  ;;  %v3126_v47 = vpop.f32.mrb[14].mxu0  ;;  %v3190_v48 = vpop.f32.mrb[14].mxu1 }
  0xf8   :  { %vm1240_vm9 = vcmp.ge.f32.partialorder %v756_v37, 0.0  ;;  %v1498_v49 = vsel %vm1242_vm7, %v764_v34, %v1370_v40  ;;  %v1368_v50 = vmul.f32 0.1, %v756_v37  ;;  %vm1304_vm10 = vcmp.ge.f32.partialorder %v1012_v41, 0.0  ;;  %v771_v52 = vpop.f32.mrb[15].mxu0  ;;  %v1027_v56 = vpop.f32.mrb[15].mxu1 }
  0xf9   :  { %v1432_v51 = vmul.f32 0.1, %v1012_v41  ;;  %v2686_v53 = vpack.c.bf16 %v1498_v49, %v1497_v29  ;;  %v1562_v54 = vsel %vm1306_vm8, %v1020_v36, %v1434_v46  ;;  %vm1245_vm11 = vcmp.ge.f32.partialorder %v777_v42, 0.0 }
  0xfa   :  { %v1373_v55 = vmul.f32 0.1, %v777_v42  ;;  %v2846_v57 = vpack.c.bf16 %v1562_v54, %v1561_v32  ;;  %v1496_v58 = vsel %vm1240_vm9, %v756_v37, %v1368_v50  ;;  %v1033_v60 = vadd.f32 %v3189_v39, %v3627_v6 }
  0xfb   :  { %v1560_v59 = vsel %vm1304_vm10, %v1012_v41, %v1432_v51  ;;  %2982 = vst [vmem:[#allocation2 + $0x28] sm:$0xff] %v2686_v53   ;;  %v2681_v61 = vpack.c.bf16 %v1496_v58, %v1495_v33  ;;  %v769_v0 = vadd.f32 %v3627_v6, %v768_v43  ;;  %v1025_v2 = vadd.f32 %v3627_v6, %v1024_v44 }
  0xfc   :  { %v2841_v62 = vpack.c.bf16 %v1560_v59, %v1559_v45  ;;  %v1501_v63 = vsel %vm1245_vm11, %v777_v42, %v1373_v55  ;;  %3014 = vst [vmem:[#allocation2 + $0x128] sm:$0xff] %v2846_v57   ;;  %vm1309_vm12 = vcmp.ge.f32.partialorder %v1033_v60, 0.0  ;;  %v1437_v1 = vmul.f32 0.1, %v1033_v60 }
  0xfd   :  { %v780_v3 = vadd.f32 %v3126_v47, %v3627_v6  ;;  %2981 = vst [vmem:[#allocation2 + $0x20] sm:$0xff] %v2681_v61   ;;  %vm1243_vm13 = vcmp.ge.f32.partialorder %v769_v0, 0.0  ;;  %v1371_v4 = vmul.f32 0.1, %v769_v0  ;;  %v1036_v5 = vadd.f32 %v3190_v48, %v3627_v6  ;;  %v3129_v8 = vpop.f32.mrb[16].mxu0  ;;  %v3193_v9 = vpop.f32.mrb[16].mxu1 }
  0xfe   :  { %3013 = vst [vmem:[#allocation2 + $0x120] sm:$0xff] %v2841_v62   ;;  %v772_v7 = vadd.f32 %v3627_v6, %v771_v52  ;;  %v1565_v10 = vsel %vm1309_vm12, %v1033_v60, %v1437_v1  ;;  %vm1307_vm14 = vcmp.ge.f32.partialorder %v1025_v2, 0.0  ;;  %v1435_v11 = vmul.f32 0.1, %v1025_v2  ;;  %v784_v12 = vpop.f32.mrb[17].mxu0  ;;  %v1040_v13 = vpop.f32.mrb[17].mxu1 }
  0xff   :  { %vm1246_vm15 = vcmp.ge.f32.partialorder %v780_v3, 0.0  ;;  %v1499_v14 = vsel %vm1243_vm13, %v769_v0, %v1371_v4  ;;  %v1374_v15 = vmul.f32 0.1, %v780_v3  ;;  %vm1310_vm0 = vcmp.ge.f32.partialorder %v1036_v5, 0.0  ;;  %v3130_v17 = vpop.f32.mrb[18].mxu0  ;;  %v3194_v21 = vpop.f32.mrb[18].mxu1 }
 0x100   :  { %v1438_v16 = vmul.f32 0.1, %v1036_v5  ;;  %v1563_v18 = vsel %vm1307_vm14, %v1025_v2, %v1435_v11  ;;  %vm1244_vm1 = vcmp.ge.f32.partialorder %v772_v7, 0.0  ;;  %v1372_v19 = vmul.f32 0.1, %v772_v7  ;;  %v787_v22 = vpop.f32.mrb[19].mxu0 }
 0x101   :  { %v1028_v20 = vadd.f32 %v3627_v6, %v1027_v56  ;;  %v1502_v23 = vsel %vm1246_vm15, %v780_v3, %v1374_v15  ;;  %v793_v25 = vadd.f32 %v3129_v8, %v3627_v6  ;;  %v1049_v26 = vadd.f32 %v3193_v9, %v3627_v6  ;;  %v1043_v27 = vpop.f32.mrb[19].mxu1 }
 0x102   :  { %v1566_v24 = vsel %vm1310_vm0, %v1036_v5, %v1438_v16  ;;  %v2696_v28 = vpack.c.bf16 %v1502_v23, %v1501_v63  ;;  %v1500_v30 = vsel %vm1244_vm1, %v772_v7, %v1372_v19  ;;  %v785_v35 = vadd.f32 %v3627_v6, %v784_v12 }
 0x103   :  { %v2856_v29 = vpack.c.bf16 %v1566_v24, %v1565_v10  ;;  %vm1308_vm2 = vcmp.ge.f32.partialorder %v1028_v20, 0.0  ;;  %v2691_v31 = vpack.c.bf16 %v1500_v30, %v1499_v14  ;;  %v1436_v32 = vmul.f32 0.1, %v1028_v20 }
 0x104   :  { %vm1249_vm3 = vcmp.ge.f32.partialorder %v793_v25, 0.0  ;;  %v1377_v33 = vmul.f32 0.1, %v793_v25  ;;  %2984 = vst [vmem:[#allocation2 + $0x38] sm:$0xff] %v2696_v28   ;;  %vm1313_vm4 = vcmp.ge.f32.partialorder %v1049_v26, 0.0  ;;  %v1041_v36 = vadd.f32 %v3627_v6, %v1040_v13 }
 0x105   :  { %3016 = vst [vmem:[#allocation2 + $0x138] sm:$0xff] %v2856_v29   ;;  %v1441_v34 = vmul.f32 0.1, %v1049_v26  ;;  %2983 = vst [vmem:[#allocation2 + $0x30] sm:$0xff] %v2691_v31   ;;  %v1564_v37 = vsel %vm1308_vm2, %v1028_v20, %v1436_v32  ;;  %v796_v39 = vadd.f32 %v3130_v17, %v3627_v6  ;;  %v1052_v40 = vadd.f32 %v3194_v21, %v3627_v6  ;;  %v3133_v41 = vpop.f32.mrb[20].mxu0  ;;  %v3197_v42 = vpop.f32.mrb[20].mxu1 }
 0x106   :  { %v1505_v38 = vsel %vm1249_vm3, %v793_v25, %v1377_v33  ;;  %v2851_v43 = vpack.c.bf16 %v1564_v37, %v1563_v18  ;;  %vm1247_vm5 = vcmp.ge.f32.partialorder %v785_v35, 0.0  ;;  %v1375_v45 = vmul.f32 0.1, %v785_v35  ;;  %v800_v46 = vpop.f32.mrb[21].mxu0  ;;  %v1056_v47 = vpop.f32.mrb[21].mxu1 }
 0x107   :  { %v1569_v44 = vsel %vm1313_vm4, %v1049_v26, %v1441_v34  ;;  %vm1311_vm6 = vcmp.ge.f32.partialorder %v1041_v36, 0.0  ;;  %v1439_v48 = vmul.f32 0.1, %v1041_v36  ;;  %vm1250_vm7 = vcmp.ge.f32.partialorder %v796_v39, 0.0  ;;  %v3134_v53 = vpop.f32.mrb[22].mxu0  ;;  %v3198_v54 = vpop.f32.mrb[22].mxu1 }
 0x108   :  { %v1378_v49 = vmul.f32 0.1, %v796_v39  ;;  %3015 = vst [vmem:[#allocation2 + $0x130] sm:$0xff] %v2851_v43   ;;  %v1503_v50 = vsel %vm1247_vm5, %v785_v35, %v1375_v45  ;;  %vm1314_vm8 = vcmp.ge.f32.partialorder %v1052_v40, 0.0  ;;  %v1442_v51 = vmul.f32 0.1, %v1052_v40 }
 0x109   :  { %v788_v52 = vadd.f32 %v3627_v6, %v787_v22  ;;  %v1567_v55 = vsel %vm1311_vm6, %v1041_v36, %v1439_v48  ;;  %v1044_v57 = vadd.f32 %v3627_v6, %v1043_v27  ;;  %v809_v58 = vadd.f32 %v3133_v41, %v3627_v6  ;;  %v803_v59 = vpop.f32.mrb[23].mxu0  ;;  %v1059_v60 = vpop.f32.mrb[23].mxu1 }
 0x10a   :  { %v1506_v56 = vsel %vm1250_vm7, %v796_v39, %v1378_v49  ;;  %v1570_v62 = vsel %vm1314_vm8, %v1052_v40, %v1442_v51  ;;  %v1065_v4 = vadd.f32 %v3197_v42, %v3627_v6  ;;  %v801_v5 = vadd.f32 %v3627_v6, %v800_v46 }
 0x10b   :  { %v2706_v61 = vpack.c.bf16 %v1506_v56, %v1505_v38  ;;  %vm1248_vm9 = vcmp.ge.f32.partialorder %v788_v52, 0.0  ;;  %v1376_v63 = vmul.f32 0.1, %v788_v52  ;;  %v2866_v0 = vpack.c.bf16 %v1570_v62, %v1569_v44 }
 0x10c   :  { %vm1312_vm10 = vcmp.ge.f32.partialorder %v1044_v57, 0.0  ;;  %v1440_v1 = vmul.f32 0.1, %v1044_v57  ;;  %vm1253_vm11 = vcmp.ge.f32.partialorder %v809_v58, 0.0  ;;  %v1381_v3 = vmul.f32 0.1, %v809_v58 }
 0x10d   :  { %2986 = vst [vmem:[#allocation2 + $0x48] sm:$0xff] %v2706_v61   ;;  %v1504_v2 = vsel %vm1248_vm9, %v788_v52, %v1376_v63  ;;  %3018 = vst [vmem:[#allocation2 + $0x148] sm:$0xff] %v2866_v0   ;;  %v1057_v9 = vadd.f32 %v3627_v6, %v1056_v47  ;;  %v812_v10 = vadd.f32 %v3134_v53, %v3627_v6  ;;  %v3137_v11 = vpop.f32.mrb[24].mxu0  ;;  %v3201_v12 = vpop.f32.mrb[24].mxu1  ;;  %vm1317_vm12 = vcmp.ge.f32.partialorder %v1065_v4, 0.0 }
 0x10e   :  { %v2701_v7 = vpack.c.bf16 %v1504_v2, %v1503_v50  ;;  %v1568_v8 = vsel %vm1312_vm10, %v1044_v57, %v1440_v1  ;;  %v1509_v14 = vsel %vm1253_vm11, %v809_v58, %v1381_v3  ;;  %v1445_v15 = vmul.f32 0.1, %v1065_v4  ;;  %v816_v16 = vpop.f32.mrb[25].mxu0  ;;  %v1072_v17 = vpop.f32.mrb[25].mxu1 }
 0x10f   :  { %v2861_v13 = vpack.c.bf16 %v1568_v8, %v1567_v55  ;;  %vm1251_vm13 = vcmp.ge.f32.partialorder %v801_v5, 0.0  ;;  %v1379_v18 = vmul.f32 0.1, %v801_v5  ;;  %vm1315_vm14 = vcmp.ge.f32.partialorder %v1057_v9, 0.0  ;;  %v3138_v23 = vpop.f32.mrb[26].mxu0  ;;  %v3202_v24 = vpop.f32.mrb[26].mxu1 }
 0x110   :  { %2985 = vst [vmem:[#allocation2 + $0x40] sm:$0xff] %v2701_v7   ;;  %v1443_v19 = vmul.f32 0.1, %v1057_v9  ;;  %v1573_v20 = vsel %vm1317_vm12, %v1065_v4, %v1445_v15  ;;  %vm1254_vm15 = vcmp.ge.f32.partialorder %v812_v10, 0.0  ;;  %v1382_v21 = vmul.f32 0.1, %v812_v10 }
 0x111   :  { %3017 = vst [vmem:[#allocation2 + $0x140] sm:$0xff] %v2861_v13   ;;  %v1068_v22 = vadd.f32 %v3198_v54, %v3627_v6  ;;  %v1507_v25 = vsel %vm1251_vm13, %v801_v5, %v1379_v18  ;;  %v804_v27 = vadd.f32 %v3627_v6, %v803_v59  ;;  %v1060_v28 = vadd.f32 %v3627_v6, %v1059_v60  ;;  %v819_v29 = vpop.f32.mrb[27].mxu0  ;;  %v1075_v30 = vpop.f32.mrb[27].mxu1 }
 0x112   :  { %v1571_v26 = vsel %vm1315_vm14, %v1057_v9, %v1443_v19  ;;  %v1510_v31 = vsel %vm1254_vm15, %v812_v10, %v1382_v21  ;;  %v825_v33 = vadd.f32 %v3137_v11, %v3627_v6  ;;  %v1081_v41 = vadd.f32 %v3201_v12, %v3627_v6 }
 0x113   :  { %vm1318_vm0 = vcmp.ge.f32.partialorder %v1068_v22, 0.0  ;;  %v1446_v32 = vmul.f32 0.1, %v1068_v22  ;;  %v2716_v34 = vpack.c.bf16 %v1510_v31, %v1509_v14  ;;  %vm1252_vm1 = vcmp.ge.f32.partialorder %v804_v27, 0.0 }
 0x114   :  { %v1380_v35 = vmul.f32 0.1, %v804_v27  ;;  %vm1316_vm2 = vcmp.ge.f32.partialorder %v1060_v28, 0.0  ;;  %v1444_v37 = vmul.f32 0.1, %v1060_v28  ;;  %vm1257_vm3 = vcmp.ge.f32.partialorder %v825_v33, 0.0 }
 0x115   :  { %v1574_v36 = vsel %vm1318_vm0, %v1068_v22, %v1446_v32  ;;  %v1385_v38 = vmul.f32 0.1, %v825_v33  ;;  %2988 = vst [vmem:[#allocation2 + $0x58] sm:$0xff] %v2716_v34   ;;  %v817_v42 = vadd.f32 %v3627_v6, %v816_v16  ;;  %v3141_v43 = vpop.f32.mrb[28].mxu0  ;;  %v3205_v44 = vpop.f32.mrb[28].mxu1  ;;  %v1073_v48 = vadd.f32 %v3627_v6, %v1072_v17 }
 0x116   :  { %v2876_v39 = vpack.c.bf16 %v1574_v36, %v1573_v20  ;;  %v1508_v40 = vsel %vm1252_vm1, %v804_v27, %v1380_v35  ;;  %v1572_v46 = vsel %vm1316_vm2, %v1060_v28, %v1444_v37  ;;  %v832_v49 = vpop.f32.mrb[29].mxu0  ;;  %v1088_v50 = vpop.f32.mrb[29].mxu1  ;;  %vm1321_vm4 = vcmp.ge.f32.partialorder %v1081_v41, 0.0 }
 0x117   :  { %v2711_v45 = vpack.c.bf16 %v1508_v40, %v1507_v25  ;;  %v1513_v47 = vsel %vm1257_vm3, %v825_v33, %v1385_v38  ;;  %v2871_v51 = vpack.c.bf16 %v1572_v46, %v1571_v26  ;;  %v1449_v52 = vmul.f32 0.1, %v1081_v41  ;;  %v3142_v53 = vpop.f32.mrb[30].mxu0  ;;  %v3206_v54 = vpop.f32.mrb[30].mxu1 }
 0x118   :  { %3020 = vst [vmem:[#allocation2 + $0x158] sm:$0xff] %v2876_v39   ;;  %vm1255_vm5 = vcmp.ge.f32.partialorder %v817_v42, 0.0  ;;  %v1383_v55 = vmul.f32 0.1, %v817_v42  ;;  %vm1319_vm6 = vcmp.ge.f32.partialorder %v1073_v48, 0.0  ;;  %v828_v57 = vadd.f32 %v3138_v23, %v3627_v6  ;;  %v835_v58 = vpop.f32.mrb[31].mxu0 }
 0x119   :  { %2987 = vst [vmem:[#allocation2 + $0x50] sm:$0xff] %v2711_v45   ;;  %v1447_v56 = vmul.f32 0.1, %v1073_v48  ;;  %3019 = vst [vmem:[#allocation2 + $0x150] sm:$0xff] %v2871_v51   ;;  %v1577_v59 = vsel %vm1321_vm4, %v1081_v41, %v1449_v52  ;;  %v1084_v60 = vadd.f32 %v3202_v24, %v3627_v6  ;;  %v820_v61 = vadd.f32 %v3627_v6, %v819_v29  ;;  %v1091_v63 = vpop.f32.mrb[31].mxu1 }
 0x11a   :  { %v1076_v62 = vadd.f32 %v3627_v6, %v1075_v30  ;;  %v1511_v0 = vsel %vm1255_vm5, %v817_v42, %v1383_v55  ;;  %vm1258_vm7 = vcmp.ge.f32.partialorder %v828_v57, 0.0  ;;  %v1386_v2 = vmul.f32 0.1, %v828_v57 }
 0x11b   :  { %v1575_v1 = vsel %vm1319_vm6, %v1073_v48, %v1447_v56  ;;  %vm1322_vm8 = vcmp.ge.f32.partialorder %v1084_v60, 0.0  ;;  %v1450_v3 = vmul.f32 0.1, %v1084_v60  ;;  %vm1256_vm9 = vcmp.ge.f32.partialorder %v820_v61, 0.0 }
 0x11c   :  { %v1384_v4 = vmul.f32 0.1, %v820_v61  ;;  %v1514_v5 = vsel %vm1258_vm7, %v828_v57, %v1386_v2  ;;  %vm1320_vm10 = vcmp.ge.f32.partialorder %v1076_v62, 0.0  ;;  %v1448_v7 = vmul.f32 0.1, %v1076_v62 }
 0x11d   :  { %v841_v8 = vadd.f32 %v3141_v43, %v3627_v6  ;;  %v2726_v9 = vpack.c.bf16 %v1514_v5, %v1513_v47  ;;  %v1578_v10 = vsel %vm1322_vm8, %v1084_v60, %v1450_v3  ;;  %v1097_v12 = vadd.f32 %v3205_v44, %v3627_v6  ;;  %v3145_v13 = vpop.f32.mrb[32].mxu0  ;;  %v3209_v14 = vpop.f32.mrb[32].mxu1 }
 0x11e   :  { %v1512_v11 = vsel %vm1256_vm9, %v820_v61, %v1384_v4  ;;  %v2886_v15 = vpack.c.bf16 %v1578_v10, %v1577_v59  ;;  %v1576_v17 = vsel %vm1320_vm10, %v1076_v62, %v1448_v7  ;;  %v848_v18 = vpop.f32.mrb[33].mxu0  ;;  %v1104_v19 = vpop.f32.mrb[33].mxu1  ;;  %v833_v24 = vadd.f32 %v3627_v6, %v832_v49 }
 0x11f   :  { %v2721_v16 = vpack.c.bf16 %v1512_v11, %v1511_v0  ;;  %vm1261_vm11 = vcmp.ge.f32.partialorder %v841_v8, 0.0  ;;  %2990 = vst [vmem:[#allocation2 + $0x68] sm:$0xff] %v2726_v9   ;;  %v2881_v20 = vpack.c.bf16 %v1576_v17, %v1575_v1  ;;  %v1389_v21 = vmul.f32 0.1, %v841_v8  ;;  %v3146_v23 = vpop.f32.mrb[34].mxu0  ;;  %v3210_v28 = vpop.f32.mrb[34].mxu1 }
 0x120   :  { %vm1325_vm12 = vcmp.ge.f32.partialorder %v1097_v12, 0.0  ;;  %v1453_v22 = vmul.f32 0.1, %v1097_v12  ;;  %3022 = vst [vmem:[#allocation2 + $0x168] sm:$0xff] %v2886_v15   ;;  %v1089_v25 = vadd.f32 %v3627_v6, %v1088_v50  ;;  %v844_v26 = vadd.f32 %v3142_v53, %v3627_v6  ;;  %v851_v29 = vpop.f32.mrb[35].mxu0  ;;  %v1107_v34 = vpop.f32.mrb[35].mxu1 }
 0x121   :  { %2989 = vst [vmem:[#allocation2 + $0x60] sm:$0xff] %v2721_v16   ;;  %v1100_v27 = vadd.f32 %v3206_v54, %v3627_v6  ;;  %3021 = vst [vmem:[#allocation2 + $0x160] sm:$0xff] %v2881_v20   ;;  %v1517_v30 = vsel %vm1261_vm11, %v841_v8, %v1389_v21  ;;  %v836_v32 = vadd.f32 %v3627_v6, %v835_v58  ;;  %vm1259_vm13 = vcmp.ge.f32.partialorder %v833_v24, 0.0 }
 0x122   :  { %v1581_v31 = vsel %vm1325_vm12, %v1097_v12, %v1453_v22  ;;  %v1092_v33 = vadd.f32 %v3627_v6, %v1091_v63  ;;  %v1387_v35 = vmul.f32 0.1, %v833_v24  ;;  %vm1323_vm14 = vcmp.ge.f32.partialorder %v1089_v25, 0.0 }
 0x123   :  { %v1451_v36 = vmul.f32 0.1, %v1089_v25  ;;  %vm1262_vm15 = vcmp.ge.f32.partialorder %v844_v26, 0.0  ;;  %v1390_v37 = vmul.f32 0.1, %v844_v26  ;;  %vm1326_vm0 = vcmp.ge.f32.partialorder %v1100_v27, 0.0 }
 0x124   :  { %v1454_v38 = vmul.f32 0.1, %v1100_v27  ;;  %v1515_v39 = vsel %vm1259_vm13, %v833_v24, %v1387_v35  ;;  %vm1260_vm1 = vcmp.ge.f32.partialorder %v836_v32, 0.0  ;;  %v1388_v41 = vmul.f32 0.1, %v836_v32 }
 0x125   :  { %v1579_v40 = vsel %vm1323_vm14, %v1089_v25, %v1451_v36  ;;  %v1518_v42 = vsel %vm1262_vm15, %v844_v26, %v1390_v37  ;;  %vm1324_vm2 = vcmp.ge.f32.partialorder %v1092_v33, 0.0  ;;  %v1452_v44 = vmul.f32 0.1, %v1092_v33  ;;  %v3149_v45 = vpop.f32.mrb[36].mxu0  ;;  %v3213_v46 = vpop.f32.mrb[36].mxu1 }
 0x126   :  { %v1582_v43 = vsel %vm1326_vm0, %v1100_v27, %v1454_v38  ;;  %v2736_v47 = vpack.c.bf16 %v1518_v42, %v1517_v30  ;;  %v1516_v49 = vsel %vm1260_vm1, %v836_v32, %v1388_v41  ;;  %v857_v50 = vadd.f32 %v3145_v13, %v3627_v6  ;;  %v3697_v51 = vpop.f32.mrb[37].mxu0  ;;  %v3699_v52 = vpop.f32.mrb[37].mxu1 }
 0x127   :  { %v2896_v48 = vpack.c.bf16 %v1582_v43, %v1581_v31  ;;  %v2731_v53 = vpack.c.bf16 %v1516_v49, %v1515_v39  ;;  %v1580_v54 = vsel %vm1324_vm2, %v1092_v33, %v1452_v44  ;;  %v1113_v55 = vadd.f32 %v3209_v14, %v3627_v6  ;;  %v3150_v57 = vpop.f32.mrb[38].mxu0  ;;  %v3214_v58 = vpop.f32.mrb[38].mxu1 }
 0x128   :  { %v849_v56 = vadd.f32 %v3627_v6, %v848_v18  ;;  %2992 = vst [vmem:[#allocation2 + $0x78] sm:$0xff] %v2736_v47   ;;  %v2891_v59 = vpack.c.bf16 %v1580_v54, %v1579_v40  ;;  %vm1265_vm3 = vcmp.ge.f32.partialorder %v857_v50, 0.0  ;;  %v1393_v60 = vmul.f32 0.1, %v857_v50  ;;  %v867_v62 = vpop.f32.mrb[39].mxu0  ;;  %v1123_v63 = vpop.f32.mrb[39].mxu1 }
 0x129   :  { %3024 = vst [vmem:[#allocation2 + $0x178] sm:$0xff] %v2896_v48   ;;  %v1105_v61 = vadd.f32 %v3627_v6, %v1104_v19  ;;  %2991 = vst [vmem:[#allocation2 + $0x70] sm:$0xff] %v2731_v53   ;;  %vm1329_vm4 = vcmp.ge.f32.partialorder %v1113_v55, 0.0  ;;  %v1457_v0 = vmul.f32 0.1, %v1113_v55  ;;  %v860_v4 = vadd.f32 %v3146_v23, %v3627_v6 }
 0x12a   :  { %vm1263_vm5 = vcmp.ge.f32.partialorder %v849_v56, 0.0  ;;  %v1391_v1 = vmul.f32 0.1, %v849_v56  ;;  %3023 = vst [vmem:[#allocation2 + $0x170] sm:$0xff] %v2891_v59   ;;  %v1521_v2 = vsel %vm1265_vm3, %v857_v50, %v1393_v60  ;;  %v1116_v8 = vadd.f32 %v3210_v28, %v3627_v6 }
 0x12b   :  { %vm1327_vm6 = vcmp.ge.f32.partialorder %v1105_v61, 0.0  ;;  %v1455_v3 = vmul.f32 0.1, %v1105_v61  ;;  %v1585_v5 = vsel %vm1329_vm4, %v1113_v55, %v1457_v0  ;;  %v852_v9 = vadd.f32 %v3627_v6, %v851_v29 }
 0x12c   :  { %v1519_v7 = vsel %vm1263_vm5, %v849_v56, %v1391_v1  ;;  %vm1266_vm7 = vcmp.ge.f32.partialorder %v860_v4, 0.0  ;;  %v1394_v11 = vmul.f32 0.1, %v860_v4  ;;  %v1108_v12 = vadd.f32 %v3627_v6, %v1107_v34 }
 0x12d   :  { %v1583_v10 = vsel %vm1327_vm6, %v1105_v61, %v1455_v3  ;;  %vm1330_vm8 = vcmp.ge.f32.partialorder %v1116_v8, 0.0  ;;  %v1458_v13 = vmul.f32 0.1, %v1116_v8  ;;  %vm1264_vm9 = vcmp.ge.f32.partialorder %v852_v9, 0.0  ;;  %v3153_v18 = vpop.f32.mrb[40].mxu0  ;;  %v3217_v19 = vpop.f32.mrb[40].mxu1 }
 0x12e   :  { %v1392_v14 = vmul.f32 0.1, %v852_v9  ;;  %v1522_v15 = vsel %vm1266_vm7, %v860_v4, %v1394_v11  ;;  %vm1328_vm10 = vcmp.ge.f32.partialorder %v1108_v12, 0.0  ;;  %v1456_v16 = vmul.f32 0.1, %v1108_v12  ;;  %v880_v24 = vpop.f32.mrb[41].mxu0 }
 0x12f   :  { %v873_v17 = vadd.f32 %v3149_v45, %v3627_v6  ;;  %v2746_v20 = vpack.c.bf16 %v1522_v15, %v1521_v2  ;;  %v1586_v21 = vsel %vm1330_vm8, %v1116_v8, %v1458_v13  ;;  %v1129_v23 = vadd.f32 %v3213_v46, %v3627_v6  ;;  %v1136_v25 = vpop.f32.mrb[41].mxu1  ;;  %v3710_v29 = vpop.f32.mrb[42].mxu0 }
 0x130   :  { %v1520_v22 = vsel %vm1264_vm9, %v852_v9, %v1392_v14  ;;  %v2906_v26 = vpack.c.bf16 %v1586_v21, %v1585_v5  ;;  %v1584_v28 = vsel %vm1328_vm10, %v1108_v12, %v1456_v16  ;;  %v3712_v30 = vpop.f32.mrb[42].mxu1  ;;  %v3714_v34 = vpop.f32.mrb[43].mxu0  ;;  %v865_v35 = vadd.f32 %v3627_v6, %v3697_v51 }
 0x131   :  { %v2741_v27 = vpack.c.bf16 %v1520_v22, %v1519_v7  ;;  %vm1269_vm11 = vcmp.ge.f32.partialorder %v873_v17, 0.0  ;;  %2994 = vst [vmem:[#allocation2 + $0x88] sm:$0xff] %v2746_v20   ;;  %v2901_v31 = vpack.c.bf16 %v1584_v28, %v1583_v10  ;;  %v1397_v32 = vmul.f32 0.1, %v873_v17  ;;  %v3722_v39 = vpop.f32.mrb[43].mxu1 }
 0x132   :  { %vm1333_vm12 = vcmp.ge.f32.partialorder %v1129_v23, 0.0  ;;  %v1461_v33 = vmul.f32 0.1, %v1129_v23  ;;  %3026 = vst [vmem:[#allocation2 + $0x188] sm:$0xff] %v2906_v26   ;;  %v1121_v36 = vadd.f32 %v3627_v6, %v3699_v52  ;;  %v876_v37 = vadd.f32 %v3150_v57, %v3627_v6 }
 0x133   :  { %2993 = vst [vmem:[#allocation2 + $0x80] sm:$0xff] %v2741_v27   ;;  %v1132_v38 = vadd.f32 %v3214_v58, %v3627_v6  ;;  %3025 = vst [vmem:[#allocation2 + $0x180] sm:$0xff] %v2901_v31   ;;  %v1525_v40 = vsel %vm1269_vm11, %v873_v17, %v1397_v32  ;;  %v868_v42 = vadd.f32 %v3627_v6, %v867_v62  ;;  %vm1267_vm13 = vcmp.ge.f32.partialorder %v865_v35, 0.0  ;;  %v3748_v17 = vld [vmem:[%s3912_s2] ss:$0 sm:$0xff]  ;;  %s3339_s2 = smov [#allocation2]  }
 0x134   :  { %v1589_v41 = vsel %vm1333_vm12, %v1129_v23, %v1461_v33  ;;  %v1124_v43 = vadd.f32 %v3627_v6, %v1123_v63  ;;  %v1395_v44 = vmul.f32 0.1, %v865_v35  ;;  %vm1331_vm14 = vcmp.ge.f32.partialorder %v1121_v36, 0.0  ;;  %s2260_s7 = sshll.u32 %s3339_s2, 4  ;;  %s2261_s7 = int_to_ptr.vmem [resolvable:$true] %s2260_s7 }
 0x135   :  { %v1459_v45 = vmul.f32 0.1, %v1121_v36  ;;  %vm1270_vm15 = vcmp.ge.f32.partialorder %v876_v37, 0.0  ;;  %v1398_v46 = vmul.f32 0.1, %v876_v37  ;;  %vm1334_vm0 = vcmp.ge.f32.partialorder %v1132_v38, 0.0  ;;  %p3319_p1 = scmp.lt.s32.totalorder %s2261_s7, %s2261_s7 }
 0x136   :  { %v1462_v47 = vmul.f32 0.1, %v1132_v38  ;;  %v1523_v48 = vsel %vm1267_vm13, %v865_v35, %v1395_v44  ;;  %vm1268_vm1 = vcmp.ge.f32.partialorder %v868_v42, 0.0  ;;  %v1396_v50 = vmul.f32 0.1, %v868_v42  ;;  %v3157_v51 = vpop.f32.mrb[44].mxu0 }
 0x137   :  { %v1587_v49 = vsel %vm1331_vm14, %v1121_v36, %v1459_v45  ;;  %v3221_v52 = vpop.f32.mrb[44].mxu1  ;;  %v1526_v53 = vsel %vm1270_vm15, %v876_v37, %v1398_v46  ;;  %vm1332_vm2 = vcmp.ge.f32.partialorder %v1124_v43, 0.0  ;;  %v1460_v55 = vmul.f32 0.1, %v1124_v43  ;;  %v3727_v56 = vpop.f32.mrb[45].mxu0  ;;  %s3314_s8 = scalar_lea.vmem %s2261_s7, 8192 }
 0x138   :  { %v1590_v54 = vsel %vm1334_vm0, %v1132_v38, %v1462_v47  ;;  %v3729_v57 = vpop.f32.mrb[45].mxu1  ;;  %v2756_v58 = vpack.c.bf16 %v1526_v53, %v1525_v40  ;;  %v1524_v60 = vsel %vm1268_vm1, %v868_v42, %v1396_v50  ;;  %v889_v61 = vadd.f32 %v3153_v18, %v3627_v6  ;;  %v3732_v62 = vpop.f32.mrb[46].mxu0  ;;  %p3315_p0 = scmp.ne.s32.totalorder %s2261_s7, %s3314_s8  ;;  %p3320_p2 = scmp.lt.s32.totalorder %s3314_s8, %s3314_s8 }
 0x139   :  { %v2916_v59 = vpack.c.bf16 %v1590_v54, %v1589_v41  ;;  %v3734_v63 = vpop.f32.mrb[46].mxu1  ;;  %v2751_v0 = vpack.c.bf16 %v1524_v60, %v1523_v48  ;;  %v1588_v1 = vsel %vm1332_vm2, %v1124_v43, %v1460_v55  ;;  %v1145_v2 = vadd.f32 %v3217_v19, %v3627_v6  ;;  %v3738_v4 = vpop.f32.mrb[47].mxu0 }
 0x13a   :  { %v881_v3 = vadd.f32 %v3627_v6, %v880_v24  ;;  %v3740_v5 = vpop.f32.mrb[47].mxu1  ;;  %2996 = vst [vmem:[#allocation2 + $0x98] sm:$0xff] %v2756_v58   ;;  %v2911_v7 = vpack.c.bf16 %v1588_v1, %v1587_v49  ;;  %vm1273_vm3 = vcmp.ge.f32.partialorder %v889_v61, 0.0  ;;  %v1401_v8 = vmul.f32 0.1, %v889_v61  ;;  %p3321_p3 = por %p3320_p2, %p3319_p1 }
 0x13b   :  { %3028 = vst [vmem:[#allocation2 + $0x198] sm:$0xff] %v2916_v59   ;;  %v1137_v9 = vadd.f32 %v3627_v6, %v1136_v25  ;;  %2995 = vst [vmem:[#allocation2 + $0x90] sm:$0xff] %v2751_v0   ;;  %vm1337_vm4 = vcmp.ge.f32.partialorder %v1145_v2, 0.0  ;;  %v1465_v10 = vmul.f32 0.1, %v1145_v2  ;;  %v892_v14 = vadd.f32 %v3710_v29, %v3627_v6 }
 0x13c   :  { %vm1271_vm5 = vcmp.ge.f32.partialorder %v881_v3, 0.0  ;;  %v1399_v11 = vmul.f32 0.1, %v881_v3  ;;  %3027 = vst [vmem:[#allocation2 + $0x190] sm:$0xff] %v2911_v7   ;;  %v1529_v12 = vsel %vm1273_vm3, %v889_v61, %v1401_v8  ;;  %v1148_v18 = vadd.f32 %v3748_v17, %v3712_v30  ;;  %p3322_p4 = pnand %p3321_p3, %p3315_p0 }
 0x13d   :  { %vm1335_vm6 = vcmp.ge.f32.partialorder %v1137_v9, 0.0  ;;  %v1463_v13 = vmul.f32 0.1, %v1137_v9  ;;  %v1593_v15 = vsel %vm1337_vm4, %v1145_v2, %v1465_v10  ;;  %v884_v19 = vadd.f32 %v3748_v17, %v3714_v34  ;;  %v3754_v20 = vpop.f32.mrb[48].mxu0  ;;  %v3756_v21 = vpop.f32.mrb[48].mxu1 }
 0x13e   :  { %v1527_v16 = vsel %vm1271_vm5, %v881_v3, %v1399_v11  ;;  %vm1274_vm7 = vcmp.ge.f32.partialorder %v892_v14, 0.0  ;;  %v1402_v6 = vmul.f32 0.1, %v892_v14  ;;  %v1140_v23 = vadd.f32 %v3748_v17, %v3722_v39  ;;  %v3760_v24 = vpop.f32.mrb[49].mxu0  ;;  %v3762_v25 = vpop.f32.mrb[49].mxu1 }
 0x13f   :  { %v1591_v22 = vsel %vm1335_vm6, %v1137_v9, %v1463_v13  ;;  %vm1338_vm8 = vcmp.ge.f32.partialorder %v1148_v18, 0.0  ;;  %v1466_v26 = vmul.f32 0.1, %v1148_v18  ;;  %vm1272_vm9 = vcmp.ge.f32.partialorder %v884_v19, 0.0  ;;  %v3765_v31 = vpop.f32.mrb[50].mxu0  ;;  %v3767_v32 = vpop.f32.mrb[50].mxu1 }
 0x140   :  { %v1400_v27 = vmul.f32 0.1, %v884_v19  ;;  %v1530_v28 = vsel %vm1274_vm7, %v892_v14, %v1402_v6  ;;  %vm1336_vm10 = vcmp.ge.f32.partialorder %v1140_v23, 0.0  ;;  %v1464_v29 = vmul.f32 0.1, %v1140_v23  ;;  %v3770_v37 = vpop.f32.mrb[51].mxu0 }
 0x141   :  { %v905_v30 = vadd.f32 %v3748_v17, %v3157_v51  ;;  %v2766_v33 = vpack.c.bf16 %v1530_v28, %v1529_v12  ;;  %v1594_v34 = vsel %vm1338_vm8, %v1148_v18, %v1466_v26  ;;  %v1161_v36 = vadd.f32 %v3748_v17, %v3221_v52  ;;  %v3772_v38 = vpop.f32.mrb[51].mxu1 }
 0x142   :  { %v1528_v35 = vsel %vm1272_vm9, %v884_v19, %v1400_v27  ;;  %v2926_v39 = vpack.c.bf16 %v1594_v34, %v1593_v15  ;;  %v1592_v41 = vsel %vm1336_vm10, %v1140_v23, %v1464_v29  ;;  %v897_v45 = vadd.f32 %v3748_v17, %v3727_v56 }
 0x143   :  { %v2761_v40 = vpack.c.bf16 %v1528_v35, %v1527_v16  ;;  %vm1277_vm11 = vcmp.ge.f32.partialorder %v905_v30, 0.0  ;;  %2998 = vst [vmem:[#allocation2 + $0xa8] sm:$0xff] %v2766_v33   ;;  %v2921_v42 = vpack.c.bf16 %v1592_v41, %v1591_v22  ;;  %v1405_v43 = vmul.f32 0.1, %v905_v30 }
 0x144   :  { %vm1341_vm12 = vcmp.ge.f32.partialorder %v1161_v36, 0.0  ;;  %v1469_v44 = vmul.f32 0.1, %v1161_v36  ;;  %3030 = vst [vmem:[#allocation2 + $0x1a8] sm:$0xff] %v2926_v39   ;;  %v1153_v46 = vadd.f32 %v3748_v17, %v3729_v57  ;;  %v908_v47 = vadd.f32 %v3748_v17, %v3732_v62 }
 0x145   :  { %2997 = vst [vmem:[#allocation2 + $0xa0] sm:$0xff] %v2761_v40   ;;  %v1164_v48 = vadd.f32 %v3748_v17, %v3734_v63  ;;  %3029 = vst [vmem:[#allocation2 + $0x1a0] sm:$0xff] %v2921_v42   ;;  %v1533_v49 = vsel %vm1277_vm11, %v905_v30, %v1405_v43  ;;  %v900_v51 = vadd.f32 %v3748_v17, %v3738_v4  ;;  %v3786_v53 = vpop.f32.mrb[52].mxu0  ;;  %v3788_v54 = vpop.f32.mrb[52].mxu1  ;;  %vm1275_vm13 = vcmp.ge.f32.partialorder %v897_v45, 0.0 }
 0x146   :  { %v1597_v50 = vsel %vm1341_vm12, %v1161_v36, %v1469_v44  ;;  %v1156_v52 = vadd.f32 %v3748_v17, %v3740_v5  ;;  %v1403_v55 = vmul.f32 0.1, %v897_v45  ;;  %vm1339_vm14 = vcmp.ge.f32.partialorder %v1153_v46, 0.0  ;;  %v3790_v62 = vpop.f32.mrb[53].mxu0  ;;  %v3792_v63 = vpop.f32.mrb[53].mxu1 }
 0x147   :  { %v1467_v56 = vmul.f32 0.1, %v1153_v46  ;;  %vm1278_vm15 = vcmp.ge.f32.partialorder %v908_v47, 0.0  ;;  %v1406_v57 = vmul.f32 0.1, %v908_v47  ;;  %vm1342_vm0 = vcmp.ge.f32.partialorder %v1164_v48, 0.0 }
 0x148   :  { %v1470_v58 = vmul.f32 0.1, %v1164_v48  ;;  %v1531_v59 = vsel %vm1275_vm13, %v897_v45, %v1403_v55  ;;  %vm1276_vm1 = vcmp.ge.f32.partialorder %v900_v51, 0.0  ;;  %v1404_v61 = vmul.f32 0.1, %v900_v51  ;;  %v3794_v3 = vpop.f32.mrb[54].mxu0 }
 0x149   :  { %v1595_v60 = vsel %vm1339_vm14, %v1153_v46, %v1467_v56  ;;  %v1534_v0 = vsel %vm1278_vm15, %v908_v47, %v1406_v57  ;;  %vm1340_vm2 = vcmp.ge.f32.partialorder %v1156_v52, 0.0  ;;  %v1468_v2 = vmul.f32 0.1, %v1156_v52  ;;  %v3796_v4 = vpop.f32.mrb[54].mxu1  ;;  %v3800_v10 = vpop.f32.mrb[55].mxu0 }
 0x14a   :  { %v1598_v1 = vsel %vm1342_vm0, %v1164_v48, %v1470_v58  ;;  %v2776_v5 = vpack.c.bf16 %v1534_v0, %v1533_v49  ;;  %v1532_v8 = vsel %vm1276_vm1, %v900_v51, %v1404_v61  ;;  %v921_v9 = vadd.f32 %v3748_v17, %v3754_v20  ;;  %v3802_v11 = vpop.f32.mrb[55].mxu1 }
 0x14b   :  { %v2936_v7 = vpack.c.bf16 %v1598_v1, %v1597_v50  ;;  %v2771_v12 = vpack.c.bf16 %v1532_v8, %v1531_v59  ;;  %v1596_v13 = vsel %vm1340_vm2, %v1156_v52, %v1468_v2  ;;  %v1177_v14 = vadd.f32 %v3748_v17, %v3756_v21 }
 0x14c   :  { %v913_v15 = vadd.f32 %v3748_v17, %v3760_v24  ;;  %3000 = vst [vmem:[#allocation2 + $0xb8] sm:$0xff] %v2776_v5   ;;  %v2931_v16 = vpack.c.bf16 %v1596_v13, %v1595_v60  ;;  %vm1281_vm3 = vcmp.ge.f32.partialorder %v921_v9, 0.0  ;;  %v1409_v18 = vmul.f32 0.1, %v921_v9 }
 0x14d   :  { %3032 = vst [vmem:[#allocation2 + $0x1b8] sm:$0xff] %v2936_v7   ;;  %v1169_v19 = vadd.f32 %v3748_v17, %v3762_v25  ;;  %2999 = vst [vmem:[#allocation2 + $0xb0] sm:$0xff] %v2771_v12   ;;  %vm1345_vm4 = vcmp.ge.f32.partialorder %v1177_v14, 0.0  ;;  %v1473_v20 = vmul.f32 0.1, %v1177_v14  ;;  %v924_v23 = vadd.f32 %v3748_v17, %v3765_v31  ;;  %v3812_v24 = vpop.f32.mrb[56].mxu0 }
 0x14e   :  { %vm1279_vm5 = vcmp.ge.f32.partialorder %v913_v15, 0.0  ;;  %v1407_v22 = vmul.f32 0.1, %v913_v15  ;;  %3031 = vst [vmem:[#allocation2 + $0x1b0] sm:$0xff] %v2931_v16   ;;  %v1537_v6 = vsel %vm1281_vm3, %v921_v9, %v1409_v18  ;;  %v3814_v26 = vpop.f32.mrb[56].mxu1  ;;  %v1180_v25 = vadd.f32 %v3748_v17, %v3767_v32  ;;  %v3820_v30 = vpop.f32.mrb[57].mxu0 }
 0x14f   :  { %vm1343_vm6 = vcmp.ge.f32.partialorder %v1169_v19, 0.0  ;;  %v1471_v21 = vmul.f32 0.1, %v1169_v19  ;;  %v1601_v27 = vsel %vm1345_vm4, %v1177_v14, %v1473_v20  ;;  %v916_v29 = vadd.f32 %v3748_v17, %v3770_v37  ;;  %v3822_v33 = vpop.f32.mrb[57].mxu1  ;;  %v3826_v36 = vpop.f32.mrb[58].mxu0 }
 0x150   :  { %v1535_v28 = vsel %vm1279_vm5, %v913_v15, %v1407_v22  ;;  %vm1282_vm7 = vcmp.ge.f32.partialorder %v924_v23, 0.0  ;;  %v1410_v35 = vmul.f32 0.1, %v924_v23  ;;  %v1172_v31 = vadd.f32 %v3748_v17, %v3772_v38  ;;  %v3828_v39 = vpop.f32.mrb[58].mxu1  ;;  %v3832_v43 = vpop.f32.mrb[59].mxu0 }
 0x151   :  { %v1599_v34 = vsel %vm1343_vm6, %v1169_v19, %v1471_v21  ;;  %vm1346_vm8 = vcmp.ge.f32.partialorder %v1180_v25, 0.0  ;;  %v1474_v40 = vmul.f32 0.1, %v1180_v25  ;;  %vm1280_vm9 = vcmp.ge.f32.partialorder %v916_v29, 0.0  ;;  %v3834_v44 = vpop.f32.mrb[59].mxu1 }
 0x152   :  { %v1408_v32 = vmul.f32 0.1, %v916_v29  ;;  %v1538_v41 = vsel %vm1282_vm7, %v924_v23, %v1410_v35  ;;  %vm1344_vm10 = vcmp.ge.f32.partialorder %v1172_v31, 0.0  ;;  %v1472_v37 = vmul.f32 0.1, %v1172_v31 }
 0x153   :  { %v937_v42 = vadd.f32 %v3748_v17, %v3786_v53  ;;  %v2786_v45 = vpack.c.bf16 %v1538_v41, %v1537_v6  ;;  %v1602_v38 = vsel %vm1346_vm8, %v1180_v25, %v1474_v40  ;;  %v1193_v47 = vadd.f32 %v3748_v17, %v3788_v54 }
 0x154   :  { %v1536_v46 = vsel %vm1280_vm9, %v916_v29, %v1408_v32  ;;  %v2946_v48 = vpack.c.bf16 %v1602_v38, %v1601_v27  ;;  %v1600_v50 = vsel %vm1344_vm10, %v1172_v31, %v1472_v37  ;;  %v929_v56 = vadd.f32 %v3748_v17, %v3790_v62 }
 0x155   :  { %v2781_v49 = vpack.c.bf16 %v1536_v46, %v1535_v28  ;;  %vm1285_vm11 = vcmp.ge.f32.partialorder %v937_v42, 0.0  ;;  %3002 = vst [vmem:[#allocation2 + $0xc8] sm:$0xff] %v2786_v45   ;;  %v2941_v51 = vpack.c.bf16 %v1600_v50, %v1599_v34  ;;  %v1413_v52 = vmul.f32 0.1, %v937_v42  ;;  %v3838_v53 = vpop.f32.mrb[60].mxu0  ;;  %v3848_v59 = vpop.f32.mrb[60].mxu1 }
 0x156   :  { %vm1349_vm12 = vcmp.ge.f32.partialorder %v1193_v47, 0.0  ;;  %v1477_v55 = vmul.f32 0.1, %v1193_v47  ;;  %3034 = vst [vmem:[#allocation2 + $0x1c8] sm:$0xff] %v2946_v48   ;;  %v1185_v57 = vadd.f32 %v3748_v17, %v3792_v63  ;;  %v940_v54 = vadd.f32 %v3748_v17, %v3794_v3  ;;  %v3850_v60 = vpop.f32.mrb[61].mxu0  ;;  %v3857_v1 = vpop.f32.mrb[61].mxu1 }
 0x157   :  { %3001 = vst [vmem:[#allocation2 + $0xc0] sm:$0xff] %v2781_v49   ;;  %v1196_v58 = vadd.f32 %v3748_v17, %v3796_v4  ;;  %3033 = vst [vmem:[#allocation2 + $0x1c0] sm:$0xff] %v2941_v51   ;;  %v1541_v61 = vsel %vm1285_vm11, %v937_v42, %v1413_v52  ;;  %v932_v62 = vadd.f32 %v3748_v17, %v3800_v10  ;;  %v3859_v2 = vpop.f32.mrb[62].mxu0  ;;  %vm1283_vm13 = vcmp.ge.f32.partialorder %v929_v56, 0.0  ;;  %v3861_v10 = vpop.f32.mrb[62].mxu1 }
 0x158   :  { %v1605_v0 = vsel %vm1349_vm12, %v1193_v47, %v1477_v55  ;;  %v1188_v63 = vadd.f32 %v3748_v17, %v3802_v11  ;;  %v1411_v3 = vmul.f32 0.1, %v929_v56  ;;  %vm1347_vm14 = vcmp.ge.f32.partialorder %v1185_v57, 0.0  ;;  %v3863_v13 = vpop.f32.mrb[63].mxu0  ;;  %v1219_v16 = vpop.f32.mrb[63].mxu1 }
 0x159   :  { %v1475_v4 = vmul.f32 0.1, %v1185_v57  ;;  %vm1286_vm15 = vcmp.ge.f32.partialorder %v940_v54, 0.0  ;;  %v1414_v5 = vmul.f32 0.1, %v940_v54  ;;  %vm1350_vm0 = vcmp.ge.f32.partialorder %v1196_v58, 0.0 }
 0x15a   :  { %v1478_v7 = vmul.f32 0.1, %v1196_v58  ;;  %v1539_v8 = vsel %vm1283_vm13, %v929_v56, %v1411_v3  ;;  %vm1284_vm1 = vcmp.ge.f32.partialorder %v932_v62, 0.0  ;;  %v1412_v12 = vmul.f32 0.1, %v932_v62 }
 0x15b   :  { %v1603_v9 = vsel %vm1347_vm14, %v1185_v57, %v1475_v4  ;;  %v1542_v11 = vsel %vm1286_vm15, %v940_v54, %v1414_v5  ;;  %vm1348_vm2 = vcmp.ge.f32.partialorder %v1188_v63, 0.0  ;;  %v1476_v15 = vmul.f32 0.1, %v1188_v63 }
 0x15c   :  { %v1606_v14 = vsel %vm1350_vm0, %v1196_v58, %v1478_v7  ;;  %v2796_v18 = vpack.c.bf16 %v1542_v11, %v1541_v61  ;;  %v1540_v20 = vsel %vm1284_vm1, %v932_v62, %v1412_v12  ;;  %v953_v22 = vadd.f32 %v3748_v17, %v3812_v24 }
 0x15d   :  { %v2956_v19 = vpack.c.bf16 %v1606_v14, %v1605_v0  ;;  %v2791_v6 = vpack.c.bf16 %v1540_v20, %v1539_v8  ;;  %v1604_v21 = vsel %vm1348_vm2, %v1188_v63, %v1476_v15  ;;  %v1209_v23 = vadd.f32 %v3748_v17, %v3814_v26 }
 0x15e   :  { %v945_v27 = vadd.f32 %v3748_v17, %v3820_v30  ;;  %3004 = vst [vmem:[#allocation2 + $0xd8] sm:$0xff] %v2796_v18   ;;  %v2951_v28 = vpack.c.bf16 %v1604_v21, %v1603_v9  ;;  %vm1289_vm3 = vcmp.ge.f32.partialorder %v953_v22, 0.0  ;;  %v1417_v25 = vmul.f32 0.1, %v953_v22 }
 0x15f   :  { %3036 = vst [vmem:[#allocation2 + $0x1d8] sm:$0xff] %v2956_v19   ;;  %v1201_v29 = vadd.f32 %v3748_v17, %v3822_v33  ;;  %3003 = vst [vmem:[#allocation2 + $0xd0] sm:$0xff] %v2791_v6   ;;  %vm1353_vm4 = vcmp.ge.f32.partialorder %v1209_v23, 0.0  ;;  %v1481_v34 = vmul.f32 0.1, %v1209_v23  ;;  %v956_v26 = vadd.f32 %v3748_v17, %v3826_v36 }
 0x160   :  { %vm1287_vm5 = vcmp.ge.f32.partialorder %v945_v27, 0.0  ;;  %v1415_v24 = vmul.f32 0.1, %v945_v27  ;;  %3035 = vst [vmem:[#allocation2 + $0x1d0] sm:$0xff] %v2951_v28   ;;  %v1545_v35 = vsel %vm1289_vm3, %v953_v22, %v1417_v25  ;;  %v1212_v40 = vadd.f32 %v3748_v17, %v3828_v39 }
 0x161   :  { %vm1351_vm6 = vcmp.ge.f32.partialorder %v1201_v29, 0.0  ;;  %v1609_v30 = vsel %vm1353_vm4, %v1209_v23, %v1481_v34  ;;  %v1479_v31 = vmul.f32 0.1, %v1201_v29  ;;  %v948_v32 = vadd.f32 %v3748_v17, %v3832_v43 }
 0x162   :  { %v1543_v33 = vsel %vm1287_vm5, %v945_v27, %v1415_v24  ;;  %vm1290_vm7 = vcmp.ge.f32.partialorder %v956_v26, 0.0  ;;  %v1418_v41 = vmul.f32 0.1, %v956_v26  ;;  %v1204_v37 = vadd.f32 %v3748_v17, %v3834_v44 }
 0x163   :  { %vm1354_vm8 = vcmp.ge.f32.partialorder %v1212_v40, 0.0  ;;  %v1482_v42 = vmul.f32 0.1, %v1212_v40  ;;  %vm1288_vm9 = vcmp.ge.f32.partialorder %v948_v32, 0.0  ;;  %v1416_v45 = vmul.f32 0.1, %v948_v32 }
 0x164   :  { %v1546_v38 = vsel %vm1290_vm7, %v956_v26, %v1418_v41  ;;  %vm1352_vm10 = vcmp.ge.f32.partialorder %v1204_v37, 0.0  ;;  %v1480_v36 = vmul.f32 0.1, %v1204_v37  ;;  %v969_v46 = vadd.f32 %v3748_v17, %v3838_v53 }
 0x165   :  { %v2806_v39 = vpack.c.bf16 %v1546_v38, %v1545_v35  ;;  %v1610_v47 = vsel %vm1354_vm8, %v1212_v40, %v1482_v42  ;;  %v1544_v48 = vsel %vm1288_vm9, %v948_v32, %v1416_v45  ;;  %v1225_v43 = vadd.f32 %v3748_v17, %v3848_v59 }
 0x166   :  { %v1607_v49 = vsel %vm1351_vm6, %v1201_v29, %v1479_v31  ;;  %v2966_v50 = vpack.c.bf16 %v1610_v47, %v1609_v30  ;;  %v2801_v44 = vpack.c.bf16 %v1544_v48, %v1543_v33  ;;  %v1608_v51 = vsel %vm1352_vm10, %v1204_v37, %v1480_v36 }
 0x167   :  { %3006 = vst [vmem:[#allocation2 + $0xe8] sm:$0xff] %v2806_v39   ;;  %v2961_v52 = vpack.c.bf16 %v1608_v51, %v1607_v49  ;;  %vm1293_vm11 = vcmp.ge.f32.partialorder %v969_v46, 0.0  ;;  %v1421_v55 = vmul.f32 0.1, %v969_v46  ;;  %v1485_v56 = vmul.f32 0.1, %v1225_v43 }
 0x168   :  { %3038 = vst [vmem:[#allocation2 + $0x1e8] sm:$0xff] %v2966_v50   ;;  %3005 = vst [vmem:[#allocation2 + $0xe0] sm:$0xff] %v2801_v44   ;;  %v961_v53 = vadd.f32 %v3748_v17, %v3850_v60  ;;  %v1217_v57 = vadd.f32 %v3748_v17, %v3857_v1  ;;  %v972_v54 = vadd.f32 %v3748_v17, %v3859_v2  ;;  %vm1357_vm12 = vcmp.ge.f32.partialorder %v1225_v43, 0.0 }
 0x169   :  { %v1228_v58 = vadd.f32 %v3748_v17, %v3861_v10  ;;  %3037 = vst [vmem:[#allocation2 + $0x1e0] sm:$0xff] %v2961_v52   ;;  %v964_v59 = vadd.f32 %v3748_v17, %v3863_v13  ;;  %v1220_v61 = vadd.f32 %v3748_v17, %v1219_v16  ;;  %v1549_v0 = vsel %vm1293_vm11, %v969_v46, %v1421_v55 }
 0x16a   :  { %vm1291_vm13 = vcmp.ge.f32.partialorder %v961_v53, 0.0  ;;  %v1419_v62 = vmul.f32 0.1, %v961_v53  ;;  %v1483_v60 = vmul.f32 0.1, %v1217_v57  ;;  %vm1294_vm14 = vcmp.ge.f32.partialorder %v972_v54, 0.0 }
 0x16b   :  { %v1422_v63 = vmul.f32 0.1, %v972_v54  ;;  %vm1358_vm15 = vcmp.ge.f32.partialorder %v1228_v58, 0.0  ;;  %v1486_v1 = vmul.f32 0.1, %v1228_v58  ;;  %v1613_v3 = vsel %vm1357_vm12, %v1225_v43, %v1485_v56 }
 0x16c   :  { %vm1355_vm0 = vcmp.ge.f32.partialorder %v1217_v57, 0.0  ;;  %vm1292_vm1 = vcmp.ge.f32.partialorder %v964_v59, 0.0  ;;  %v1420_v2 = vmul.f32 0.1, %v964_v59  ;;  %vm1356_vm2 = vcmp.ge.f32.partialorder %v1220_v61, 0.0 }
 0x16d   :  { %v1550_v4 = vsel %vm1294_vm14, %v972_v54, %v1422_v63  ;;  %v1614_v5 = vsel %vm1358_vm15, %v1228_v58, %v1486_v1  ;;  %v1484_v7 = vmul.f32 0.1, %v1220_v61  ;;  %v1547_v17 = vsel %vm1291_vm13, %v961_v53, %v1419_v62 }
 0x16e   :  { %v2816_v8 = vpack.c.bf16 %v1550_v4, %v1549_v0  ;;  %v2976_v9 = vpack.c.bf16 %v1614_v5, %v1613_v3  ;;  %v1548_v12 = vsel %vm1292_vm1, %v964_v59, %v1420_v2  ;;  %v1611_v10 = vsel %vm1355_vm0, %v1217_v57, %v1483_v60 }
 0x16f   :  { %v2811_v13 = vpack.c.bf16 %v1548_v12, %v1547_v17  ;;  %v1612_v11 = vsel %vm1356_vm2, %v1220_v61, %v1484_v7 }
 0x170   :  { %3008 = vst [vmem:[#allocation2 + $0xf8] sm:$0xff] %v2816_v8   ;;  %3040 = vst [vmem:[#allocation2 + $0x1f8] sm:$0xff] %v2976_v9   ;;  %v2971_v14 = vpack.c.bf16 %v1612_v11, %v1611_v10 }
 0x171   :  { %3007 = vst [vmem:[#allocation2 + $0xf0] sm:$0xff] %v2811_v13  }
 0x172   :  { %3039 = vst [vmem:[#allocation2 + $0x1f0] sm:$0xff] %v2971_v14  }
 0x173   :  { %3325 = shalt.err (!%p3322_p4)
}
 0x174   :  { %s3326_s11 = scalar_lea.hbm %s3913_s3, 8192 }
 0x175   :  { %p3327_p5 = scmp.ne.s32.totalorder %s3913_s3, %s3326_s11  ;;  %p3330_p6 = scmp.lt.u32.totalorder %s3326_s11, %s3913_s3 }
 0x177   :  { %p3332_p7 = pnand %p3330_p6, %p3327_p5 }
 0x179   :  { %3335 = shalt.err (!%p3332_p7)
}
 0x17a   :  { %s3340_s16 = smov 64   ;;  %s3341_s17 = smov 4  }
 0x17b   :  { %2266 = dma.vmem_to_hbm [thread:$0]  %s2261_s7, 8192, %s3913_s3, [#allocation3], %s3340_s16, %s3340_s16, %s3341_s17  }
 0x17c   :  { %3336 = dma.done.wait [#allocation3], 8192  }
 0x17d   :  { %3337 = vsyncadd [#allocation3], 4294959104 }
 0x17e   :  { %2270 = vsyncpa [#allocation3], 1 }

</bundles_post_ra>
